<compile_context>
chip_gen: v5e
topology: v5e:2x2
jax: 0.10.0
libtpu: 0.0.40
codegen_flags: <defaults>
</compile_context>

<pallas_src>
import functools
import math

import jax
import jax.numpy as jnp
from jax.experimental import pallas as pl
from jax.experimental.pallas import tpu as pltpu


def _round_up(x, m):
    return ((x + m - 1) // m) * m


def _vmem_capacity_bytes():
    """Per-core VMEM capacity; conservative fallback if the query is unavailable."""
    try:
        return int(pltpu.get_tpu_info().vmem_capacity_bytes)
    except Exception:
        return 64 * 1024 * 1024  # v7x per-core size; safe lower bound for all gens


def _choose_block_b(B, fea_dim, cat_type, sub_dim, sub_pad, mem_dim, budget_bytes):
    """Largest B tile (<= 512 rows, multiple of 8) whose double-buffered streams
    plus resident weights and in-kernel temporaries fit the VMEM budget."""
    itemsize = 4
    cat_sub_pad = cat_type * sub_pad
    # streamed arrays (x, appear, att) are double-buffered by the pipeline
    stream_per_row = 2 * itemsize * (fea_dim + cat_sub_pad + cat_type * mem_dim)
    # in-kernel temporaries (feat_all, att, exp, out) per row
    temp_per_row = itemsize * (cat_sub_pad + 3 * mem_dim + sub_pad)
    # resident weights (constant index maps), counted double-buffered to be safe
    weights = 2 * itemsize * (fea_dim * cat_sub_pad + cat_sub_pad
                              + sub_pad * mem_dim + mem_dim * sub_pad)
    avail = budget_bytes - weights
    tb = avail // (stream_per_row + temp_per_row) if avail > 0 else 8
    tb = int(max(8, min(512, (tb // 8) * 8)))
    return min(tb, _round_up(B, 8))


def _memory_module_kernel(x_ref, w_ref, b_ref, mem_t_ref, mem_ref,
                          appear_ref, att_ref, *,
                          cat_type, sub_pad, shrink_thres, pack_appear):
    """One grid step == one B-tile, all categories handled inside.

    x_ref      : (TB, fea_dim)
    w_ref      : (fea_dim, cat_type*sub_pad)   pre-transposed, 128-padded per cat
    b_ref      : (1, cat_type*sub_pad)
    mem_t_ref  : (sub_pad, mem_dim)            memory.weight^T, zero-padded rows
    mem_ref    : (mem_dim, sub_pad)            memory.weight, zero-padded columns
    appear_ref : (TB, cat_type*sub_pad)  if pack_appear else (cat_type, TB, sub_pad)
    att_ref    : (cat_type, TB, mem_dim)
    """
    # 1) All per-category Linears batched into ONE wide MXU matmul
    #    (N = cat_type*sub_pad instead of sub_dim per tiny matmul).
    feat_all = jnp.dot(x_ref[...], w_ref[...],
                       preferred_element_type=jnp.float32) + b_ref[...]
    mem_t = mem_t_ref[...]          # (sub_pad, mem_dim)
    mem = mem_ref[...]              # (mem_dim, sub_pad)

    for c in range(cat_type):       # cat_type is small & static -> unrolled
        # 128-aligned lane slice (sub_pad % 128 == 0); the pad columns are zero.
        feat = feat_all[:, c * sub_pad:(c + 1) * sub_pad]                 # (TB, sub_pad)
        att = jnp.dot(feat, mem_t, preferred_element_type=jnp.float32)    # (TB, mem_dim)

        if shrink_thres > 0:
            # Softmax over the memory dim.  Exact divide on purpose:
            # hard_shrink_relu below is discontinuous at `shrink_thres`, so we do
            # not perturb the value compared against the threshold.
            att = att - jnp.max(att, axis=1, keepdims=True)
            e = jnp.exp(att)
            att = e / jnp.sum(e, axis=1, keepdims=True)
            # hard_shrink_relu(a) = relu(a - l) * a / (|a - l| + eps)
            # EUP approximate reciprocal -> runs in the otherwise idle EUP slot.
            diff = att - shrink_thres
            att = (jnp.maximum(diff, 0.0) * att *
                   pl.reciprocal(jnp.abs(diff) + 1e-12, approx=True))
            # F.normalize(p=1): att >= 0 after the shrink, so no abs is needed.
            att = att / jnp.maximum(jnp.sum(att, axis=1, keepdims=True), 1e-12)

        out = jnp.dot(att, mem, preferred_element_type=jnp.float32)       # (TB, sub_pad)

        if pack_appear:
            # sub_dim % 128 == 0 (sub_pad == sub_dim): lane-aligned direct write.
            appear_ref[:, c * sub_pad:(c + 1) * sub_pad] = out.astype(appear_ref.dtype)
        else:
            # Full 128-lane-width unmasked store; pad columns sliced off in wrapper.
            appear_ref[c] = out.astype(appear_ref.dtype)
        att_ref[c] = att.astype(att_ref.dtype)


def memory_module_forward(x, w_cat, b_cat, mem_w, shrink_thres=0.0025,
                          block_b=None, out_dtype=jnp.float32):
    """x: [B, fea_dim]; w_cat: [cat, sub, fea]; b_cat: [cat, sub]; mem_w: [mem, sub].
    Returns (appear_feat_list [B, cat*sub], att_weight_list [B, mem, cat]).
    out_dtype=jnp.bfloat16 halves the output write-back bandwidth if downstream
    tolerates it (att is post-softmax, bounded in [0, 1])."""
    B, fea_dim = x.shape
    cat_type, sub_dim, _ = w_cat.shape
    mem_dim = mem_w.shape[0]
    cat_sub = cat_type * sub_dim
    sub_pad = _round_up(sub_dim, 128)       # keep every in-kernel slice vreg-aligned
    cat_sub_pad = cat_type * sub_pad

    # Generation-aware VMEM budget (v7x: 64 MiB/core, v5e/v6e: 128 MiB).
    vmem_cap = _vmem_capacity_bytes()
    vmem_limit = int(max(32 << 20, min(vmem_cap // 2, 64 << 20)))
    if block_b is None:
        block_b = _choose_block_b(B, fea_dim, cat_type, sub_dim, sub_pad, mem_dim,
                                  vmem_limit - (6 << 20))
    block_b = int(max(8, _round_up(min(int(block_b), _round_up(B, 8)), 8)))
    b_pad = _round_up(B, block_b)
    x_p = x if b_pad == B else jnp.pad(x, ((0, b_pad - B), (0, 0)))

    # One-time layout plumbing in the wrapper: pre-transpose / zero-pad so every
    # in-kernel dot is a plain (M,K)@(K,N) MXU matmul, every slice is aligned and
    # every store is full lane width.
    w_pad = jnp.pad(w_cat, ((0, 0), (0, sub_pad - sub_dim), (0, 0)))
    w_all_t = jnp.transpose(w_pad.reshape(cat_sub_pad, fea_dim))   # (fea, cat*sub_pad)
    b_all = jnp.pad(b_cat, ((0, 0), (0, sub_pad - sub_dim))).reshape(1, cat_sub_pad)
    mem_t = jnp.pad(jnp.transpose(mem_w), ((0, sub_pad - sub_dim), (0, 0)))  # (sub_pad, mem)
    mem_p = jnp.pad(mem_w, ((0, 0), (0, sub_pad - sub_dim)))                 # (mem, sub_pad)

    # Lane-dense direct [B, cat*sub] appear output when the per-category column
    # blocks are already 128-aligned; otherwise write a (cat, B, sub_pad) slab
    # (full unmasked lane-width stores) and repack once in the wrapper.
    pack_appear = (sub_dim % 128 == 0)
    if pack_appear:
        appear_shape = jax.ShapeDtypeStruct((b_pad, cat_sub), out_dtype)
        appear_spec = pl.BlockSpec((block_b, cat_sub), lambda i: (i, 0))
    else:
        appear_shape = jax.ShapeDtypeStruct((cat_type, b_pad, sub_pad), out_dtype)
        appear_spec = pl.BlockSpec((cat_type, block_b, sub_pad), lambda i: (0, i, 0))

    kernel = functools.partial(
        _memory_module_kernel, cat_type=cat_type, sub_pad=sub_pad,
        shrink_thres=shrink_thres, pack_appear=pack_appear)

    appear_raw, att_slabs = pl.pallas_call(
        kernel,
        out_shape=(appear_shape,
                   jax.ShapeDtypeStruct((cat_type, b_pad, mem_dim), out_dtype)),
        grid=(b_pad // block_b,),
        in_specs=[
            pl.BlockSpec((block_b, fea_dim), lambda i: (i, 0)),      # x: streamed B tiles
            pl.BlockSpec((fea_dim, cat_sub_pad), lambda i: (0, 0)),  # W_all^T: resident
            pl.BlockSpec((1, cat_sub_pad), lambda i: (0, 0)),        # biases: resident
            pl.BlockSpec((sub_pad, mem_dim), lambda i: (0, 0)),      # mem^T: resident
            pl.BlockSpec((mem_dim, sub_pad), lambda i: (0, 0)),      # mem (padded): resident
        ],
        out_specs=(appear_spec,
                   pl.BlockSpec((cat_type, block_b, mem_dim), lambda i: (0, i, 0))),
        compiler_params=pltpu.CompilerParams(
            # The B-tile axis is embarrassingly parallel -> megacore sharding on v7x.
            dimension_semantics=("parallel",),
            vmem_limit_bytes=vmem_limit,
        ),
    )(x_p, w_all_t, b_all, mem_t, mem_p)

    if pack_appear:
        appear_feat_list = appear_raw[:B]
    else:
        appear_feat_list = jnp.transpose(
            appear_raw[:, :B, :sub_dim], (1, 0, 2)).reshape(B, cat_sub)
    # PyTorch contract is [B, mem_dim, cat_type]; downstream code that can consume
    # the lane-dense (cat, B, mem) slab directly should skip this transpose pass.
    att_weight_list = jnp.transpose(att_slabs[:, :B, :], (1, 2, 0))
    return appear_feat_list, att_weight_list


def _reference_forward(x, w_cat, b_cat, mem_w, shrink_thres=0.0025):
    """Pure-JAX reference mirroring the PyTorch forward (f32, highest precision).
    Also returns the pre-shrink softmax (for the threshold-discontinuity mask)."""
    hp = jax.lax.Precision.HIGHEST
    appear_list, att_list, soft_list = [], [], []
    for c in range(w_cat.shape[0]):
        feat = jnp.dot(x, w_cat[c].T, precision=hp) + b_cat[c]
        att = jnp.dot(feat, mem_w.T, precision=hp)
        soft = att
        if shrink_thres > 0:
            att = jax.nn.softmax(att, axis=1)
            soft = att
            diff = att - shrink_thres
            att = jnp.maximum(diff, 0.0) * att / (jnp.abs(diff) + 1e-12)
            att = att / jnp.maximum(jnp.sum(jnp.abs(att), axis=1, keepdims=True), 1e-12)
        out = jnp.dot(att, mem_w, precision=hp)
        appear_list.append(out)
        att_list.append(att)
        soft_list.append(soft)
    return (jnp.concatenate(appear_list, axis=-1),
            jnp.stack(att_list, axis=-1),
            jnp.stack(soft_list, axis=-1))


def _check_case(B, fea_dim, cat_type, mem_dim, shrink_thres, key, block_b=None):
    sub_dim = fea_dim // cat_type
    kx, kw, kb, km = jax.random.split(key, 4)

    x = jax.random.normal(kx, (B, fea_dim), dtype=jnp.float32)
    lin_stdv = 1.0 / math.sqrt(fea_dim)
    w_cat = jax.random.uniform(kw, (cat_type, sub_dim, fea_dim),
                               minval=-lin_stdv, maxval=lin_stdv, dtype=jnp.float32)
    b_cat = jax.random.uniform(kb, (cat_type, sub_dim),
                               minval=-lin_stdv, maxval=lin_stdv, dtype=jnp.float32)
    mem_stdv = 1.0 / math.sqrt(sub_dim)
    mem_w = jax.random.uniform(km, (mem_dim, sub_dim),
                               minval=-mem_stdv, maxval=mem_stdv, dtype=jnp.float32)

    appear, att = memory_module_forward(x, w_cat, b_cat, mem_w, shrink_thres,
                                        block_b=block_b)
    jax.block_until_ready((appear, att))
    assert appear.shape == (B, cat_type * sub_dim)
    assert att.shape == (B, mem_dim, cat_type)

    ref_appear, ref_att, ref_soft = _reference_forward(x, w_cat, b_cat, mem_w,
                                                       shrink_thres)

    # hard_shrink_relu is discontinuous at (softmax == shrink_thres).  Rows whose
    # pre-shrink softmax has an element within 1e-7 of the threshold can
    # legitimately land on either side of the jump under f32/MXU rounding, so
    # exclude those (statistically ~0) rows from the element-wise comparison.
    safe = jnp.abs(ref_soft - shrink_thres) > 1e-7        # [B, mem, cat]
    row_safe = jnp.all(safe, axis=1)                      # [B, cat]
    assert float(jnp.mean(row_safe.astype(jnp.float32))) > 0.9

    att_mask = row_safe[:, None, :]
    appear_mask = jnp.repeat(row_safe, sub_dim, axis=1)   # [B, cat*sub]
    assert bool(jnp.allclose(jnp.where(att_mask, att, 0.0),
                             jnp.where(att_mask, ref_att, 0.0),
                             atol=1e-5, rtol=1e-2))
    assert bool(jnp.allclose(jnp.where(appear_mask, appear, 0.0),
                             jnp.where(appear_mask, ref_appear, 0.0),
                             atol=1e-4, rtol=1e-2))


if __name__ == "__main__":
    key = jax.random.PRNGKey(0)
    k1, k2, k3 = jax.random.split(key, 3)

    # Module-realistic (but small) shapes: fea=400, cat=4 -> sub=100 (slab appear
    # path, padded to 128 lanes), mem=256.  block_b=16 exercises multi-tile
    # pipelining + batch padding (B=50 -> 64).
    _check_case(50, 400, 4, 256, 0.0025, k1, block_b=16)
    # Same shapes with the automatic VMEM-budget-derived B tile.
    _check_case(50, 400, 4, 256, 0.0025, k2, block_b=None)
    # 128-aligned sub_dim -> direct lane-dense appear write (no wrapper transpose).
    _check_case(24, 256, 2, 128, 0.0025, k3, block_b=8)

    print("KERNEL_OK")
</pallas_src>

<mosaic_0001>
module attributes {stable_mosaic.version = 11 : i64} {
  func.func @_memory_module_kernel(%arg0: i32, %arg1: memref<16x400xf32, #tpu.memory_space<vmem>>, %arg2: memref<400x512xf32, #tpu.memory_space<vmem>>, %arg3: memref<1x512xf32, #tpu.memory_space<vmem>>, %arg4: memref<128x256xf32, #tpu.memory_space<vmem>>, %arg5: memref<256x128xf32, #tpu.memory_space<vmem>>, %arg6: memref<4x16x128xf32, #tpu.memory_space<vmem>>, %arg7: memref<4x16x256xf32, #tpu.memory_space<vmem>>) attributes {dimension_semantics = [#tpu.dimension_semantics<parallel>], iteration_bounds = array<i64: 4>, scalar_prefetch = 0 : i64, scratch_operands = 0 : i64, tpu.core_type = #tpu.core_type<tc>, window_params = [{transform_indices = @transform_0, window_bounds = array<i64: 16, 400>}, {pipeline_mode = #tpu.pipeline_mode<synchronous>, transform_indices = @transform_1, window_bounds = array<i64: 400, 512>}, {pipeline_mode = #tpu.pipeline_mode<synchronous>, transform_indices = @transform_2, window_bounds = array<i64: 1, 512>}, {pipeline_mode = #tpu.pipeline_mode<synchronous>, transform_indices = @transform_3, window_bounds = array<i64: 128, 256>}, {pipeline_mode = #tpu.pipeline_mode<synchronous>, transform_indices = @transform_4, window_bounds = array<i64: 256, 128>}, {transform_indices = @transform_5, window_bounds = array<i64: 4, 16, 128>}, {transform_indices = @transform_6, window_bounds = array<i64: 4, 16, 256>}]} {
    %c0 = arith.constant 0 : index
    %c0_0 = arith.constant 0 : index
    %0 = vector.load %arg1[%c0, %c0_0] : memref<16x400xf32, #tpu.memory_space<vmem>>, vector<16x400xf32>
    %c0_1 = arith.constant 0 : index
    %c0_2 = arith.constant 0 : index
    %1 = vector.load %arg2[%c0_1, %c0_2] : memref<400x512xf32, #tpu.memory_space<vmem>>, vector<400x512xf32>
    %cst = arith.constant dense<0.000000e+00> : vector<16x512xf32>
    %2 = tpu.matmul %0, %1, %cst {dimension_numbers = #tpu.dot_dimension_numbers<[1], [0], [0], [1], [0, 0, 1, 1], [], []>} : vector<16x400xf32>, vector<400x512xf32>, vector<16x512xf32> -> vector<16x512xf32>
    %c0_3 = arith.constant 0 : index
    %c0_4 = arith.constant 0 : index
    %3 = vector.load %arg3[%c0_3, %c0_4] : memref<1x512xf32, #tpu.memory_space<vmem>>, vector<1x512xf32>
    %4 = vector.broadcast %3 : vector<1x512xf32> to vector<16x512xf32>
    %5 = arith.addf %2, %4 : vector<16x512xf32>
    %c0_5 = arith.constant 0 : index
    %c0_6 = arith.constant 0 : index
    %6 = vector.load %arg4[%c0_5, %c0_6] : memref<128x256xf32, #tpu.memory_space<vmem>>, vector<128x256xf32>
    %c0_7 = arith.constant 0 : index
    %c0_8 = arith.constant 0 : index
    %7 = vector.load %arg5[%c0_7, %c0_8] : memref<256x128xf32, #tpu.memory_space<vmem>>, vector<256x128xf32>
    %8 = vector.extract_strided_slice %5 {offsets = [0, 0], sizes = [16, 128], strides = [1, 1]} : vector<16x512xf32> to vector<16x128xf32>
    %cst_9 = arith.constant dense<0.000000e+00> : vector<16x256xf32>
    %9 = tpu.matmul %8, %6, %cst_9 {dimension_numbers = #tpu.dot_dimension_numbers<[1], [0], [0], [1], [0, 0, 1, 1], [], []>} : vector<16x128xf32>, vector<128x256xf32>, vector<16x256xf32> -> vector<16x256xf32>
    %cst_10 = arith.constant dense<0xFF800000> : vector<16xf32>
    %10 = vector.multi_reduction <maximumf>, %9, %cst_10 [1] : vector<16x256xf32> to vector<16xf32>
    %11 = vector.shape_cast %10 : vector<16xf32> to vector<16x1xf32>
    %12 = vector.broadcast %11 : vector<16x1xf32> to vector<16x256xf32>
    %13 = arith.subf %9, %12 : vector<16x256xf32>
    %14 = math.exp %13 : vector<16x256xf32>
    %cst_11 = arith.constant dense<0.000000e+00> : vector<16xf32>
    %15 = vector.multi_reduction <add>, %14, %cst_11 [1] : vector<16x256xf32> to vector<16xf32>
    %16 = vector.shape_cast %15 : vector<16xf32> to vector<16x1xf32>
    %17 = vector.broadcast %16 : vector<16x1xf32> to vector<16x256xf32>
    %18 = arith.divf %14, %17 : vector<16x256xf32>
    %cst_12 = arith.constant 2.500000e-03 : f32
    %19 = vector.broadcast %cst_12 : f32 to vector<16x256xf32>
    %20 = arith.subf %18, %19 : vector<16x256xf32>
    %cst_13 = arith.constant 0.000000e+00 : f32
    %21 = vector.broadcast %cst_13 : f32 to vector<16x256xf32>
    %22 = arith.maximumf %20, %21 : vector<16x256xf32>
    %23 = arith.mulf %22, %18 : vector<16x256xf32>
    %24 = math.absf %20 : vector<16x256xf32>
    %cst_14 = arith.constant 9.99999996E-13 : f32
    %25 = vector.broadcast %cst_14 : f32 to vector<16x256xf32>
    %26 = arith.addf %24, %25 : vector<16x256xf32>
    %27 = tpu.reciprocal %26 {approx = true} : vector<16x256xf32> -> vector<16x256xf32>
    %28 = arith.mulf %23, %27 : vector<16x256xf32>
    %cst_15 = arith.constant dense<0.000000e+00> : vector<16xf32>
    %29 = vector.multi_reduction <add>, %28, %cst_15 [1] : vector<16x256xf32> to vector<16xf32>
    %30 = vector.shape_cast %29 : vector<16xf32> to vector<16x1xf32>
    %cst_16 = arith.constant 9.99999996E-13 : f32
    %31 = vector.broadcast %cst_16 : f32 to vector<16x1xf32>
    %32 = arith.maximumf %30, %31 : vector<16x1xf32>
    %33 = vector.broadcast %32 : vector<16x1xf32> to vector<16x256xf32>
    %34 = arith.divf %28, %33 : vector<16x256xf32>
    %cst_17 = arith.constant dense<0.000000e+00> : vector<16x128xf32>
    %35 = tpu.matmul %34, %7, %cst_17 {dimension_numbers = #tpu.dot_dimension_numbers<[1], [0], [0], [1], [0, 0, 1, 1], [], []>} : vector<16x256xf32>, vector<256x128xf32>, vector<16x128xf32> -> vector<16x128xf32>
    %c0_18 = arith.constant 0 : index
    %c0_19 = arith.constant 0 : index
    %c0_20 = arith.constant 0 : index
    %36 = vector.load %arg6[%c0_18, %c0_19, %c0_20] : memref<4x16x128xf32, #tpu.memory_space<vmem>>, vector<1x16x128xf32>
    %37 = vector.shape_cast %36 : vector<1x16x128xf32> to vector<16x128xf32>
    %38 = vector.shape_cast %35 : vector<16x128xf32> to vector<1x16x128xf32>
    tpu.vector_store %arg6[%c0_18, %c0_19, %c0_20], %38 {strides = array<i32>} : memref<4x16x128xf32, #tpu.memory_space<vmem>>, vector<1x16x128xf32>,
    %c0_21 = arith.constant 0 : index
    %c0_22 = arith.constant 0 : index
    %c0_23 = arith.constant 0 : index
    %39 = vector.load %arg7[%c0_21, %c0_22, %c0_23] : memref<4x16x256xf32, #tpu.memory_space<vmem>>, vector<1x16x256xf32>
    %40 = vector.shape_cast %39 : vector<1x16x256xf32> to vector<16x256xf32>
    %41 = vector.shape_cast %34 : vector<16x256xf32> to vector<1x16x256xf32>
    tpu.vector_store %arg7[%c0_21, %c0_22, %c0_23], %41 {strides = array<i32>} : memref<4x16x256xf32, #tpu.memory_space<vmem>>, vector<1x16x256xf32>,
    %42 = vector.extract_strided_slice %5 {offsets = [0, 128], sizes = [16, 128], strides = [1, 1]} : vector<16x512xf32> to vector<16x128xf32>
    %cst_24 = arith.constant dense<0.000000e+00> : vector<16x256xf32>
    %43 = tpu.matmul %42, %6, %cst_24 {dimension_numbers = #tpu.dot_dimension_numbers<[1], [0], [0], [1], [0, 0, 1, 1], [], []>} : vector<16x128xf32>, vector<128x256xf32>, vector<16x256xf32> -> vector<16x256xf32>
    %cst_25 = arith.constant dense<0xFF800000> : vector<16xf32>
    %44 = vector.multi_reduction <maximumf>, %43, %cst_25 [1] : vector<16x256xf32> to vector<16xf32>
    %45 = vector.shape_cast %44 : vector<16xf32> to vector<16x1xf32>
    %46 = vector.broadcast %45 : vector<16x1xf32> to vector<16x256xf32>
    %47 = arith.subf %43, %46 : vector<16x256xf32>
    %48 = math.exp %47 : vector<16x256xf32>
    %cst_26 = arith.constant dense<0.000000e+00> : vector<16xf32>
    %49 = vector.multi_reduction <add>, %48, %cst_26 [1] : vector<16x256xf32> to vector<16xf32>
    %50 = vector.shape_cast %49 : vector<16xf32> to vector<16x1xf32>
    %51 = vector.broadcast %50 : vector<16x1xf32> to vector<16x256xf32>
    %52 = arith.divf %48, %51 : vector<16x256xf32>
    %cst_27 = arith.constant 2.500000e-03 : f32
    %53 = vector.broadcast %cst_27 : f32 to vector<16x256xf32>
    %54 = arith.subf %52, %53 : vector<16x256xf32>
    %cst_28 = arith.constant 0.000000e+00 : f32
    %55 = vector.broadcast %cst_28 : f32 to vector<16x256xf32>
    %56 = arith.maximumf %54, %55 : vector<16x256xf32>
    %57 = arith.mulf %56, %52 : vector<16x256xf32>
    %58 = math.absf %54 : vector<16x256xf32>
    %cst_29 = arith.constant 9.99999996E-13 : f32
    %59 = vector.broadcast %cst_29 : f32 to vector<16x256xf32>
    %60 = arith.addf %58, %59 : vector<16x256xf32>
    %61 = tpu.reciprocal %60 {approx = true} : vector<16x256xf32> -> vector<16x256xf32>
    %62 = arith.mulf %57, %61 : vector<16x256xf32>
    %cst_30 = arith.constant dense<0.000000e+00> : vector<16xf32>
    %63 = vector.multi_reduction <add>, %62, %cst_30 [1] : vector<16x256xf32> to vector<16xf32>
    %64 = vector.shape_cast %63 : vector<16xf32> to vector<16x1xf32>
    %cst_31 = arith.constant 9.99999996E-13 : f32
    %65 = vector.broadcast %cst_31 : f32 to vector<16x1xf32>
    %66 = arith.maximumf %64, %65 : vector<16x1xf32>
    %67 = vector.broadcast %66 : vector<16x1xf32> to vector<16x256xf32>
    %68 = arith.divf %62, %67 : vector<16x256xf32>
    %cst_32 = arith.constant dense<0.000000e+00> : vector<16x128xf32>
    %69 = tpu.matmul %68, %7, %cst_32 {dimension_numbers = #tpu.dot_dimension_numbers<[1], [0], [0], [1], [0, 0, 1, 1], [], []>} : vector<16x256xf32>, vector<256x128xf32>, vector<16x128xf32> -> vector<16x128xf32>
    %c1 = arith.constant 1 : index
    %c0_33 = arith.constant 0 : index
    %c0_34 = arith.constant 0 : index
    %70 = vector.load %arg6[%c1, %c0_33, %c0_34] : memref<4x16x128xf32, #tpu.memory_space<vmem>>, vector<1x16x128xf32>
    %71 = vector.shape_cast %70 : vector<1x16x128xf32> to vector<16x128xf32>
    %72 = vector.shape_cast %69 : vector<16x128xf32> to vector<1x16x128xf32>
    tpu.vector_store %arg6[%c1, %c0_33, %c0_34], %72 {strides = array<i32>} : memref<4x16x128xf32, #tpu.memory_space<vmem>>, vector<1x16x128xf32>,
    %c1_35 = arith.constant 1 : index
    %c0_36 = arith.constant 0 : index
    %c0_37 = arith.constant 0 : index
    %73 = vector.load %arg7[%c1_35, %c0_36, %c0_37] : memref<4x16x256xf32, #tpu.memory_space<vmem>>, vector<1x16x256xf32>
    %74 = vector.shape_cast %73 : vector<1x16x256xf32> to vector<16x256xf32>
    %75 = vector.shape_cast %68 : vector<16x256xf32> to vector<1x16x256xf32>
    tpu.vector_store %arg7[%c1_35, %c0_36, %c0_37], %75 {strides = array<i32>} : memref<4x16x256xf32, #tpu.memory_space<vmem>>, vector<1x16x256xf32>,
    %76 = vector.extract_strided_slice %5 {offsets = [0, 256], sizes = [16, 128], strides = [1, 1]} : vector<16x512xf32> to vector<16x128xf32>
    %cst_38 = arith.constant dense<0.000000e+00> : vector<16x256xf32>
    %77 = tpu.matmul %76, %6, %cst_38 {dimension_numbers = #tpu.dot_dimension_numbers<[1], [0], [0], [1], [0, 0, 1, 1], [], []>} : vector<16x128xf32>, vector<128x256xf32>, vector<16x256xf32> -> vector<16x256xf32>
    %cst_39 = arith.constant dense<0xFF800000> : vector<16xf32>
    %78 = vector.multi_reduction <maximumf>, %77, %cst_39 [1] : vector<16x256xf32> to vector<16xf32>
    %79 = vector.shape_cast %78 : vector<16xf32> to vector<16x1xf32>
    %80 = vector.broadcast %79 : vector<16x1xf32> to vector<16x256xf32>
    %81 = arith.subf %77, %80 : vector<16x256xf32>
    %82 = math.exp %81 : vector<16x256xf32>
    %cst_40 = arith.constant dense<0.000000e+00> : vector<16xf32>
    %83 = vector.multi_reduction <add>, %82, %cst_40 [1] : vector<16x256xf32> to vector<16xf32>
    %84 = vector.shape_cast %83 : vector<16xf32> to vector<16x1xf32>
    %85 = vector.broadcast %84 : vector<16x1xf32> to vector<16x256xf32>
    %86 = arith.divf %82, %85 : vector<16x256xf32>
    %cst_41 = arith.constant 2.500000e-03 : f32
    %87 = vector.broadcast %cst_41 : f32 to vector<16x256xf32>
    %88 = arith.subf %86, %87 : vector<16x256xf32>
    %cst_42 = arith.constant 0.000000e+00 : f32
    %89 = vector.broadcast %cst_42 : f32 to vector<16x256xf32>
    %90 = arith.maximumf %88, %89 : vector<16x256xf32>
    %91 = arith.mulf %90, %86 : vector<16x256xf32>
    %92 = math.absf %88 : vector<16x256xf32>
    %cst_43 = arith.constant 9.99999996E-13 : f32
    %93 = vector.broadcast %cst_43 : f32 to vector<16x256xf32>
    %94 = arith.addf %92, %93 : vector<16x256xf32>
    %95 = tpu.reciprocal %94 {approx = true} : vector<16x256xf32> -> vector<16x256xf32>
    %96 = arith.mulf %91, %95 : vector<16x256xf32>
    %cst_44 = arith.constant dense<0.000000e+00> : vector<16xf32>
    %97 = vector.multi_reduction <add>, %96, %cst_44 [1] : vector<16x256xf32> to vector<16xf32>
    %98 = vector.shape_cast %97 : vector<16xf32> to vector<16x1xf32>
    %cst_45 = arith.constant 9.99999996E-13 : f32
    %99 = vector.broadcast %cst_45 : f32 to vector<16x1xf32>
    %100 = arith.maximumf %98, %99 : vector<16x1xf32>
    %101 = vector.broadcast %100 : vector<16x1xf32> to vector<16x256xf32>
    %102 = arith.divf %96, %101 : vector<16x256xf32>
    %cst_46 = arith.constant dense<0.000000e+00> : vector<16x128xf32>
    %103 = tpu.matmul %102, %7, %cst_46 {dimension_numbers = #tpu.dot_dimension_numbers<[1], [0], [0], [1], [0, 0, 1, 1], [], []>} : vector<16x256xf32>, vector<256x128xf32>, vector<16x128xf32> -> vector<16x128xf32>
    %c2 = arith.constant 2 : index
    %c0_47 = arith.constant 0 : index
    %c0_48 = arith.constant 0 : index
    %104 = vector.load %arg6[%c2, %c0_47, %c0_48] : memref<4x16x128xf32, #tpu.memory_space<vmem>>, vector<1x16x128xf32>
    %105 = vector.shape_cast %104 : vector<1x16x128xf32> to vector<16x128xf32>
    %106 = vector.shape_cast %103 : vector<16x128xf32> to vector<1x16x128xf32>
    tpu.vector_store %arg6[%c2, %c0_47, %c0_48], %106 {strides = array<i32>} : memref<4x16x128xf32, #tpu.memory_space<vmem>>, vector<1x16x128xf32>,
    %c2_49 = arith.constant 2 : index
    %c0_50 = arith.constant 0 : index
    %c0_51 = arith.constant 0 : index
    %107 = vector.load %arg7[%c2_49, %c0_50, %c0_51] : memref<4x16x256xf32, #tpu.memory_space<vmem>>, vector<1x16x256xf32>
    %108 = vector.shape_cast %107 : vector<1x16x256xf32> to vector<16x256xf32>
    %109 = vector.shape_cast %102 : vector<16x256xf32> to vector<1x16x256xf32>
    tpu.vector_store %arg7[%c2_49, %c0_50, %c0_51], %109 {strides = array<i32>} : memref<4x16x256xf32, #tpu.memory_space<vmem>>, vector<1x16x256xf32>,
    %110 = vector.extract_strided_slice %5 {offsets = [0, 384], sizes = [16, 128], strides = [1, 1]} : vector<16x512xf32> to vector<16x128xf32>
    %cst_52 = arith.constant dense<0.000000e+00> : vector<16x256xf32>
    %111 = tpu.matmul %110, %6, %cst_52 {dimension_numbers = #tpu.dot_dimension_numbers<[1], [0], [0], [1], [0, 0, 1, 1], [], []>} : vector<16x128xf32>, vector<128x256xf32>, vector<16x256xf32> -> vector<16x256xf32>
    %cst_53 = arith.constant dense<0xFF800000> : vector<16xf32>
    %112 = vector.multi_reduction <maximumf>, %111, %cst_53 [1] : vector<16x256xf32> to vector<16xf32>
    %113 = vector.shape_cast %112 : vector<16xf32> to vector<16x1xf32>
    %114 = vector.broadcast %113 : vector<16x1xf32> to vector<16x256xf32>
    %115 = arith.subf %111, %114 : vector<16x256xf32>
    %116 = math.exp %115 : vector<16x256xf32>
    %cst_54 = arith.constant dense<0.000000e+00> : vector<16xf32>
    %117 = vector.multi_reduction <add>, %116, %cst_54 [1] : vector<16x256xf32> to vector<16xf32>
    %118 = vector.shape_cast %117 : vector<16xf32> to vector<16x1xf32>
    %119 = vector.broadcast %118 : vector<16x1xf32> to vector<16x256xf32>
    %120 = arith.divf %116, %119 : vector<16x256xf32>
    %cst_55 = arith.constant 2.500000e-03 : f32
    %121 = vector.broadcast %cst_55 : f32 to vector<16x256xf32>
    %122 = arith.subf %120, %121 : vector<16x256xf32>
    %cst_56 = arith.constant 0.000000e+00 : f32
    %123 = vector.broadcast %cst_56 : f32 to vector<16x256xf32>
    %124 = arith.maximumf %122, %123 : vector<16x256xf32>
    %125 = arith.mulf %124, %120 : vector<16x256xf32>
    %126 = math.absf %122 : vector<16x256xf32>
    %cst_57 = arith.constant 9.99999996E-13 : f32
    %127 = vector.broadcast %cst_57 : f32 to vector<16x256xf32>
    %128 = arith.addf %126, %127 : vector<16x256xf32>
    %129 = tpu.reciprocal %128 {approx = true} : vector<16x256xf32> -> vector<16x256xf32>
    %130 = arith.mulf %125, %129 : vector<16x256xf32>
    %cst_58 = arith.constant dense<0.000000e+00> : vector<16xf32>
    %131 = vector.multi_reduction <add>, %130, %cst_58 [1] : vector<16x256xf32> to vector<16xf32>
    %132 = vector.shape_cast %131 : vector<16xf32> to vector<16x1xf32>
    %cst_59 = arith.constant 9.99999996E-13 : f32
    %133 = vector.broadcast %cst_59 : f32 to vector<16x1xf32>
    %134 = arith.maximumf %132, %133 : vector<16x1xf32>
    %135 = vector.broadcast %134 : vector<16x1xf32> to vector<16x256xf32>
    %136 = arith.divf %130, %135 : vector<16x256xf32>
    %cst_60 = arith.constant dense<0.000000e+00> : vector<16x128xf32>
    %137 = tpu.matmul %136, %7, %cst_60 {dimension_numbers = #tpu.dot_dimension_numbers<[1], [0], [0], [1], [0, 0, 1, 1], [], []>} : vector<16x256xf32>, vector<256x128xf32>, vector<16x128xf32> -> vector<16x128xf32>
    %c3 = arith.constant 3 : index
    %c0_61 = arith.constant 0 : index
    %c0_62 = arith.constant 0 : index
    %138 = vector.load %arg6[%c3, %c0_61, %c0_62] : memref<4x16x128xf32, #tpu.memory_space<vmem>>, vector<1x16x128xf32>
    %139 = vector.shape_cast %138 : vector<1x16x128xf32> to vector<16x128xf32>
    %140 = vector.shape_cast %137 : vector<16x128xf32> to vector<1x16x128xf32>
    tpu.vector_store %arg6[%c3, %c0_61, %c0_62], %140 {strides = array<i32>} : memref<4x16x128xf32, #tpu.memory_space<vmem>>, vector<1x16x128xf32>,
    %c3_63 = arith.constant 3 : index
    %c0_64 = arith.constant 0 : index
    %c0_65 = arith.constant 0 : index
    %141 = vector.load %arg7[%c3_63, %c0_64, %c0_65] : memref<4x16x256xf32, #tpu.memory_space<vmem>>, vector<1x16x256xf32>
    %142 = vector.shape_cast %141 : vector<1x16x256xf32> to vector<16x256xf32>
    %143 = vector.shape_cast %136 : vector<16x256xf32> to vector<1x16x256xf32>
    tpu.vector_store %arg7[%c3_63, %c0_64, %c0_65], %143 {strides = array<i32>} : memref<4x16x256xf32, #tpu.memory_space<vmem>>, vector<1x16x256xf32>,
    return
  }
  func.func @transform_0(%arg0: i32) -> (i32, i32) {
    %c0_i32 = arith.constant 0 : i32
    %c0_i32_0 = arith.constant 0 : i32
    return %arg0, %c0_i32 : i32, i32
  }
  func.func @transform_1(%arg0: i32) -> (i32, i32) {
    %c0_i32 = arith.constant 0 : i32
    %c0_i32_0 = arith.constant 0 : i32
    %c0_i32_1 = arith.constant 0 : i32
    return %c0_i32, %c0_i32_0 : i32, i32
  }
  func.func @transform_2(%arg0: i32) -> (i32, i32) {
    %c0_i32 = arith.constant 0 : i32
    %c0_i32_0 = arith.constant 0 : i32
    %c0_i32_1 = arith.constant 0 : i32
    return %c0_i32, %c0_i32_0 : i32, i32
  }
  func.func @transform_3(%arg0: i32) -> (i32, i32) {
    %c0_i32 = arith.constant 0 : i32
    %c0_i32_0 = arith.constant 0 : i32
    %c0_i32_1 = arith.constant 0 : i32
    return %c0_i32, %c0_i32_0 : i32, i32
  }
  func.func @transform_4(%arg0: i32) -> (i32, i32) {
    %c0_i32 = arith.constant 0 : i32
    %c0_i32_0 = arith.constant 0 : i32
    %c0_i32_1 = arith.constant 0 : i32
    return %c0_i32, %c0_i32_0 : i32, i32
  }
  func.func @transform_5(%arg0: i32) -> (i32, i32, i32) {
    %c0_i32 = arith.constant 0 : i32
    %c0_i32_0 = arith.constant 0 : i32
    %c0_i32_1 = arith.constant 0 : i32
    return %c0_i32, %arg0, %c0_i32_0 : i32, i32, i32
  }
  func.func @transform_6(%arg0: i32) -> (i32, i32, i32) {
    %c0_i32 = arith.constant 0 : i32
    %c0_i32_0 = arith.constant 0 : i32
    %c0_i32_1 = arith.constant 0 : i32
    return %c0_i32, %arg0, %c0_i32_0 : i32, i32, i32
  }
}

</mosaic_0001>

<bundles_post_ra>
// kernel: tpu_custom_call.1
= control target key start
LH: loop header
LB: loop body
LE: loop exit
PB: predicated region body
PF: predicated region fallthrough
CT: control target
= control target key end

     0   :  { %12 = vsyncpa [#allocation3], 0  ;;  %s3578_s0 = inlined_call_operand.hbm [shape: f32[64,400], index: 0, kind: input, shape index: {}]   ;;  %s3579_s1 = inlined_call_operand.hbm [shape: f32[400,512], index: 1, kind: input, shape index: {}]   ;;  %s3580_s2 = inlined_call_operand.hbm [shape: f32[1,512], index: 2, kind: input, shape index: {}]   ;;  %s3581_s3 = inlined_call_operand.hbm [shape: f32[128,256], index: 3, kind: input, shape index: {}]   ;;  %s3582_s4 = inlined_call_operand.hbm [shape: f32[256,128], index: 4, kind: input, shape index: {}]   ;;  %s3583_s5 = inlined_call_operand.hbm [shape: f32[4,64,128], index: 5, kind: output, shape index: {0}]   ;;  %s3584_s6 = inlined_call_operand.hbm [shape: f32[4,64,256], index: 6, kind: output, shape index: {1}]  }
   0x1   :  { %14 = vsyncpa [#allocation3 + $0x1], 0 }
   0x2   :  { %15 = vsyncpa [#allocation6], 0 }
   0x3   :  { %16 = vsyncpa [#allocation9], 0 }
   0x4   :  { %17 = vsyncpa [#allocation4], 0 }
   0x5   :  { %19 = vsyncpa [#allocation4 + $0x1], 0 }
   0x6   :  { %20 = vsyncpa [#allocation13], 0 }
   0x7   :  { %22 = vsyncpa [#allocation13 + $0x1], 0  ;;  %s2687_s21 = smov 0   ;;  %s2689_s22 = smov 0  }
   0x8   :  { %s2691_s23 = smov 0   ;;  %s2693_s24 = smov 0  }
   0x9 LB: > { %s2708_s25 = sadd.s32 4294967295, %s2626_s24   ;;  %s2131_s26 = sadd.s32 4294967294, %s2626_s24   ;;  %s2626_s24 = sphi %s2693_s24, %s3602_s24   ;;  %s2622_s23 = sphi %s2691_s23, %s3601_s23   ;;  %s2618_s22 = sphi %s2689_s22, %s3600_s22   ;;  %s2614_s21 = sphi %s2687_s21, %s3599_s21  }
   0xa   : > { %p48_p0 = scmp.ne.s32.totalorder %s2618_s22, %s2614_s21  ;;  %p49_p1 = scmp.eq.s32.totalorder %s2708_s25, 0 }
   0xb   : > { %p156_p2 = scmp.eq.s32.totalorder %s2708_s25, 3  ;;  %p162_p3 = scmp.eq.s32.totalorder %s2131_s26, 3 }
   0xc   : > { %p2717_p4 = por %p49_p1, %p48_p0  ;;  %p2132_p5 = scmp.ge.s32.totalorder %s2626_s24, 1 }
   0xd   : > { %p2722_p6 = por %p162_p3, %p48_p0  ;;  %p195_p7 = scmp.lt.s32.totalorder %s2626_s24, 5 }
   0xe   : > { %s206_s7 = sshll.u32 %s3579_s1, 4  ;;  %s2628_s9 = smov [#allocation5]   ;;  %s207_s7 = int_to_ptr.hbm [resolvable:$true] %s206_s7 }
   0xf   : > { %p2730_p8 = pnand %p2132_p5, %p195_p7  ;;  %s208_s10 = sshll.u32 %s2628_s9, 4  ;;  %s209_s10 = int_to_ptr.vmem [resolvable:$true] %s208_s10 }
  0x10   : > { %s232_s14 = sshll.u32 %s3581_s3, 4  ;;  %s3585_s15 = smov 512   ;;  %s233_s14 = int_to_ptr.hbm [resolvable:$true] %s232_s14 }
  0x11   : > { %p2240_p9 = pneg %p2730_p8  ;;  %s3586_s16 = smov 32  }
  0x12   : > { %s2631_s17 = smov [#allocation8]   ;;  %s2632_s19 = smov 256  }
  0x13   : > { %p2738_p10 = pnand %p2240_p9, %p49_p1  ;;  %s234_s18 = sshll.u32 %s2631_s17, 4  ;;  %s235_s18 = int_to_ptr.vmem [resolvable:$true] %s234_s18 }
  0x14   : > { %s2633_s20 = smov 16   ;;  %s221_s30 = sshll.u32 %s3580_s2, 4  ;;  %s222_s30 = int_to_ptr.hbm [resolvable:$true] %s221_s30 }
  0x15   : > { %2243 = dma.hbm_to_vmem [thread:$0]  (!%p2738_p10), %s207_s7, 25600, %s209_s10, [#allocation6], %s3585_s15, %s3585_s15, %s3586_s16  }
  0x16   : > { %2249 = dma.hbm_to_vmem [thread:$0]  (!%p2738_p10), %s233_s14, 4096, %s235_s18, [#allocation9], %s2632_s19, %s2632_s19, %s2633_s20  }
  0x17   : > { %s2634_s9 = smov [#allocation7]   ;;  %s246_s13 = sshll.u32 %s3582_s4, 4  ;;  %s247_s13 = int_to_ptr.hbm [resolvable:$true] %s246_s13 }
  0x18   : > { %s223_s7 = sshll.u32 %s2634_s9, 4  ;;  %s2635_s14 = smov [#allocation10]   ;;  %s224_s7 = int_to_ptr.vmem [resolvable:$true] %s223_s7 }
  0x19   : > { %2246 = dma.hbm_to_vmem [thread:$0]  (!%p2738_p10), %s222_s30, 64, %s224_s7, [#allocation6]  }
  0x1a   : > { %s248_s17 = sshll.u32 %s2635_s14, 4  ;;  %s2636_s18 = smov 128   ;;  %s249_s17 = int_to_ptr.vmem [resolvable:$true] %s248_s17 }
  0x1b   : > { %s2637_s19 = smov 8   ;;  %s2763_s20 = sadd.s32 1, %s2626_s24  }
  0x1c   : > { %2252 = dma.hbm_to_vmem [thread:$0]  (!%p2738_p10), %s247_s13, 4096, %s249_s17, [#allocation9], %s2636_s18, %s2636_s18, %s2637_s19  }
  0x1d   : > { %s32_s26 = ssub.s32 %s2626_s24, %s2763_s20  ;;  %s35_s29 = sadd.s32 1, %s2622_s23 }
  0x1e   : > { %p33_p11 = scmp.eq.s32.totalorder %s32_s26, 0  ;;  %p42_p12 = scmp.ne.s32.totalorder %s2622_s23, %s2618_s22 }
  0x1f   : > { %p43_p13 = scmp.eq.s32.totalorder %s2626_s24, 0  ;;  %p2268_p5 = scmp.lt.s32.totalorder %s2626_s24, 4 }
  0x20   : > { %s2772_s30 = scalar_select %p33_p11, %s2622_s23, %s35_s29  }
  0x21   : > { %p44_p0 = por %p43_p13, %p42_p12  ;;  %p2776_p3 = por %p156_p2, %p42_p12 }
  0x22   : > { %s262_s7 = sand.u32 1, %s2622_s23   ;;  %s2202_s10 = sshll.u32 %s2626_s24, 6 }
  0x23   : > { %s2138_s11 = sshll.u32 %s262_s7, 6  ;;  %s272_s14 = scalar_lea.hbm %s3578_s0, %s2202_s10 }
  0x24   : > { %s266_s17 = scalar_lea.vmem [#allocation2], %s2138_s11  ;;  %s273_s19 = sshll.u32 %s272_s14, 4  ;;  %s274_s19 = int_to_ptr.hbm [resolvable:$true] %s273_s19 }
  0x25   : > { %s275_s18 = sshll.u32 %s266_s17, 4  ;;  %p2786_p7 = pnand %p2268_p5, %p44_p0  ;;  %s276_s18 = int_to_ptr.vmem [resolvable:$true] %s275_s18 }
  0x26   : > { %s263_s29 = scalar_lea.sflag [#allocation3], %s262_s7  ;;  %s2546_s15 = sshra.s32 %s274_s19, 4  ;;  %s2547_s15 = int_to_ptr.hbm [resolvable:$true] %s2546_s15 }
  0x27   : > { %s2548_s16 = scalar_lea.hbm %s2547_s15, 64  ;;  %p2550_p9 = pneg %p2786_p7 }
  0x28   : > { %p2549_p2 = scmp.ne.s32.totalorder %s2547_s15, %s2548_s16  ;;  %s2553_s12 = scalar_lea.hbm %s3578_s0, 256 }
  0x29   : > { %p2554_p12 = scmp.lt.s32.totalorder %s2547_s15, %s3578_s0  ;;  %p2555_p13 = scmp.lt.s32.totalorder %s2553_s12, %s2548_s16 }
  0x2a   : > { %p2551_p10 = pnand %p2550_p9, %p2549_p2 }
  0x2b   : > { %p2556_p0 = por %p2555_p13, %p2554_p12 }
  0x2c   : > { %p2552_p11 = pneg %p2551_p10 }
  0x2e   : > { %p2557_p5 = pnand %p2556_p0, %p2552_p11 }
  0x30   : > { %2560 = shalt.err (!%p2557_p5)
}
  0x31   : > { %s3593_s7 = smov 32   ;;  %s3594_s17 = smov 512  }
  0x32   : > { %2256 = dma.hbm_to_vmem [thread:$0]  (!%p2786_p7), %s274_s19, 1024, %s276_s18, %s263_s29, %s3594_s17, %s3594_s17, %s3593_s7  }
  0x33   : > { %287 = sbr.rel (%p2730_p8) target bundleno = 1042 (0x412), region = 40  ;;  %s2806_s10 = sand.u32 (!%p2730_p8), 1, %s2618_s22  }
  0x34   : > { %s2143_s15 = sshll.u32 (!%p2730_p8), %s2806_s10, 6  ;;  %s290_s16 = scalar_lea.sflag (!%p2730_p8), [#allocation3], %s2806_s10 }
  0x35   : > { %s2812_s11 = scalar_lea.vmem (!%p2730_p8), [#allocation2], %s2143_s15 }
  0x38   : > { %2593 = dma.done.wait (%p2717_p4), %s290_s16, 1024  }
  0x39   : > { %2595 = vsyncadd (%p2717_p4), %s290_s16, 4294966272 }
  0x3a   : > { %2597 = dma.done.wait (%p49_p1), [#allocation6], 25664  }
  0x3b   : > { %2599 = vsyncadd (%p49_p1), [#allocation6], 4294941632 }
  0x3c   : > { %2601 = dma.done.wait (%p49_p1), [#allocation9], 8192  }
  0x3d   : > { %2603 = vsyncadd (%p49_p1), [#allocation9], 4294959104  ;;  %v419_v0 = vld [vmem:[#allocation5 + $0x1e0] sm:$0xff]  ;;  %v420_v13 = vld [vmem:[#allocation5 + $0x1e8] sm:$0xff]  ;;  %vm569_vm0 = vcmask 130048   ;;  %s2149_s27 = sshll.u32 %s2806_s10, 7 }
  0x3e   : > { %v547_v1 = vld [vmem:[#allocation5 + $0x5e0] sm:$0xff]  ;;  %576 = vmatpush.msra.mxu0 %v419_v0  ;;  %v416_v15 = vld [vmem:[#allocation5 + $0x1c8] sm:$0xff]  ;;  %v2827_v62 = vld [vmem:[%s2812_s11 + $0x10] sm:$0xff]  ;;  %s3411_s8 = scalar_lea.vmem [#allocation12], %s2149_s27  ;;  %s3509_s18 = scalar_lea.vmem [#allocation11], %s2143_s15 }
  0x3f   : > { %v415_v2 = vld [vmem:[#allocation5 + $0x1c0] sm:$0xff]  ;;  %622 = vmatpush.msra.mxu2 %v547_v1  ;;  %v412_v19 = vld [vmem:[#allocation5 + $0x1a8] sm:$0xff]  ;;  %s1903_s19 = scalar_lea.sflag [#allocation4], %s2806_s10  ;;  %s1908_s26 = scalar_lea.sflag [#allocation13], %s2806_s10 }
  0x40   : > { %v483_v3 = vld [vmem:[#allocation5 + $0x3e0] sm:$0xff]  ;;  %577 = vmatpush.msra.mxu0 %v415_v2  ;;  %v408_v23 = vld [vmem:[#allocation5 + $0x188] sm:$0xff] }
  0x41   : > { %v543_v4 = vld [vmem:[#allocation5 + $0x5c0] sm:$0xff]  ;;  %599 = vmatpush.msra.mxu1 %v483_v3  ;;  %v404_v27 = vld [vmem:[#allocation5 + $0x168] sm:$0xff]  ;;  %v2833_v3 = vld [vmem:[%s2812_s11 + $0x18] sm:$0xff] }
  0x42   : > { %v555_v5 = vld [vmem:[#allocation5 + $0x620] sm:$0xff]  ;;  %623 = vmatpush.msra.mxu2 %v543_v4  ;;  %v400_v31 = vld [vmem:[#allocation5 + $0x148] sm:$0xff] }
  0x43   : > { %659 = vmatpush.msra.mxu3 %v555_v5  ;;  %v411_v6 = vld [vmem:[#allocation5 + $0x1a0] sm:$0xff]  ;;  %v396_v35 = vld [vmem:[#allocation5 + $0x128] sm:$0xff] }
  0x44   : > { %v479_v7 = vld [vmem:[#allocation5 + $0x3c0] sm:$0xff]  ;;  %578 = vmatpush.msra.mxu0 %v411_v6  ;;  %v392_v39 = vld [vmem:[#allocation5 + $0x108] sm:$0xff] }
  0x45   : > { %v539_v8 = vld [vmem:[#allocation5 + $0x5a0] sm:$0xff]  ;;  %600 = vmatpush.msra.mxu1 %v479_v7  ;;  %v388_v43 = vld [vmem:[#allocation5 + $0xe8] sm:$0xff] }
  0x46   : > { %v551_v9 = vld [vmem:[#allocation5 + $0x600] sm:$0xff]  ;;  %624 = vmatpush.msra.mxu2 %v539_v8  ;;  %v384_v47 = vld [vmem:[#allocation5 + $0xc8] sm:$0xff] }
  0x47   : > { %v475_v10 = vld [vmem:[#allocation5 + $0x3a0] sm:$0xff]  ;;  %660 = vmatpush.msra.mxu3 %v551_v9  ;;  %v380_v51 = vld [vmem:[#allocation5 + $0xa8] sm:$0xff] }
  0x48   : > { %v407_v11 = vld [vmem:[#allocation5 + $0x180] sm:$0xff]  ;;  %601 = vmatpush.msra.mxu1 %v475_v10  ;;  %v376_v55 = vld [vmem:[#allocation5 + $0x88] sm:$0xff]  ;;  %2150 = vmatmul.msk.f32.vlgmr.msra.gmra.mxu3 %vm569_vm0, %v2833_v3 }
  0x49   : > { %v535_v12 = vld [vmem:[#allocation5 + $0x580] sm:$0xff]  ;;  %668 = vmatpush.msrb.mxu3 %v420_v13  ;;  %579 = vmatpush.msra.mxu0 %v407_v11  ;;  %v372_v59 = vld [vmem:[#allocation5 + $0x68] sm:$0xff] }
  0x4a   : > { %v471_v14 = vld [vmem:[#allocation5 + $0x380] sm:$0xff]  ;;  %625 = vmatpush.msra.mxu2 %v535_v12  ;;  %v484_v63 = vld [vmem:[#allocation5 + $0x3e8] sm:$0xff] }
  0x4b   : > { %v403_v16 = vld [vmem:[#allocation5 + $0x160] sm:$0xff]  ;;  %602 = vmatpush.msra.mxu1 %v471_v14  ;;  %669 = vmatpush.msrb.mxu3 %v416_v15  ;;  %v368_v1 = vld [vmem:[#allocation5 + $0x48] sm:$0xff]  ;;  %v421_v14 = vld [vmem:[#allocation5 + $0x1f0] sm:$0xff] }
  0x4c   : > { %v531_v17 = vld [vmem:[#allocation5 + $0x560] sm:$0xff]  ;;  %580 = vmatpush.msra.mxu0 %v403_v16  ;;  %v480_v4 = vld [vmem:[#allocation5 + $0x3c8] sm:$0xff]  ;;  %v2844_v15 = vld [vmem:[%s2812_s11 + $0x30] sm:$0xff] }
  0x4d   : > { %v467_v18 = vld [vmem:[#allocation5 + $0x360] sm:$0xff]  ;;  %626 = vmatpush.msra.mxu2 %v531_v17  ;;  %670 = vmatpush.msrb.mxu3 %v412_v19  ;;  %v548_v5 = vld [vmem:[#allocation5 + $0x5e8] sm:$0xff] }
  0x4e   : > { %v399_v20 = vld [vmem:[#allocation5 + $0x140] sm:$0xff]  ;;  %603 = vmatpush.msra.mxu1 %v467_v18  ;;  %v364_v6 = vld [vmem:[#allocation5 + $0x28] sm:$0xff]  ;;  %v417_v18 = vld [vmem:[#allocation5 + $0x1d0] sm:$0xff] }
  0x4f   : > { %v527_v21 = vld [vmem:[#allocation5 + $0x540] sm:$0xff]  ;;  %581 = vmatpush.msra.mxu0 %v399_v20  ;;  %671 = vmatpush.msrb.mxu3 %v408_v23  ;;  %v2837_v7 = vld [vmem:[%s2812_s11 + $0x8] sm:$0xff] }
  0x50   : > { %v463_v22 = vld [vmem:[#allocation5 + $0x340] sm:$0xff]  ;;  %627 = vmatpush.msra.mxu2 %v527_v21  ;;  %v476_v8 = vld [vmem:[#allocation5 + $0x3a8] sm:$0xff]  ;;  %v2851_v21 = vld [vmem:[%s2812_s11 + $0x38] sm:$0xff] }
  0x51   : > { %v395_v24 = vld [vmem:[#allocation5 + $0x120] sm:$0xff]  ;;  %604 = vmatpush.msra.mxu1 %v463_v22  ;;  %672 = vmatpush.msrb.mxu3 %v404_v27  ;;  %v544_v9 = vld [vmem:[#allocation5 + $0x5c8] sm:$0xff] }
  0x52   : > { %v523_v25 = vld [vmem:[#allocation5 + $0x520] sm:$0xff]  ;;  %582 = vmatpush.msra.mxu0 %v395_v24  ;;  %v360_v10 = vld [vmem:[#allocation5 + $0x8] sm:$0xff]  ;;  %v413_v24 = vld [vmem:[#allocation5 + $0x1b0] sm:$0xff]  ;;  %2151 = vmatmul.msk.f32.gmra.mxu3 %vm569_vm0, %v2851_v21 }
  0x53   : > { %v459_v26 = vld [vmem:[#allocation5 + $0x320] sm:$0xff]  ;;  %628 = vmatpush.msra.mxu2 %v523_v25  ;;  %673 = vmatpush.msrb.mxu3 %v400_v31  ;;  %v556_v11 = vld [vmem:[#allocation5 + $0x628] sm:$0xff]  ;;  %v485_v25 = vld [vmem:[#allocation5 + $0x3f0] sm:$0xff] }
  0x54   : > { %v391_v28 = vld [vmem:[#allocation5 + $0x100] sm:$0xff]  ;;  %605 = vmatpush.msra.mxu1 %v459_v26  ;;  %v472_v12 = vld [vmem:[#allocation5 + $0x388] sm:$0xff] }
  0x55   : > { %v519_v29 = vld [vmem:[#allocation5 + $0x500] sm:$0xff]  ;;  %583 = vmatpush.msra.mxu0 %v391_v28  ;;  %674 = vmatpush.msrb.mxu3 %v396_v35  ;;  %v540_v13 = vld [vmem:[#allocation5 + $0x5a8] sm:$0xff] }
  0x56   : > { %v455_v30 = vld [vmem:[#allocation5 + $0x300] sm:$0xff]  ;;  %629 = vmatpush.msra.mxu2 %v519_v29  ;;  %v468_v16 = vld [vmem:[#allocation5 + $0x368] sm:$0xff]  ;;  %v409_v29 = vld [vmem:[#allocation5 + $0x190] sm:$0xff] }
  0x57   : > { %v387_v32 = vld [vmem:[#allocation5 + $0xe0] sm:$0xff]  ;;  %606 = vmatpush.msra.mxu1 %v455_v30  ;;  %675 = vmatpush.msrb.mxu3 %v392_v39  ;;  %v536_v17 = vld [vmem:[#allocation5 + $0x588] sm:$0xff]  ;;  %v481_v30 = vld [vmem:[#allocation5 + $0x3d0] sm:$0xff] }
  0x58   : > { %v515_v33 = vld [vmem:[#allocation5 + $0x4e0] sm:$0xff]  ;;  %584 = vmatpush.msra.mxu0 %v387_v32  ;;  %v552_v19 = vld [vmem:[#allocation5 + $0x608] sm:$0xff] }
  0x59   : > { %v451_v34 = vld [vmem:[#allocation5 + $0x2e0] sm:$0xff]  ;;  %630 = vmatpush.msra.mxu2 %v515_v33  ;;  %676 = vmatpush.msrb.mxu3 %v388_v43  ;;  %v464_v22 = vld [vmem:[#allocation5 + $0x348] sm:$0xff]  ;;  %v405_v33 = vld [vmem:[#allocation5 + $0x170] sm:$0xff] }
  0x5a   : > { %v383_v36 = vld [vmem:[#allocation5 + $0xc0] sm:$0xff]  ;;  %607 = vmatpush.msra.mxu1 %v451_v34  ;;  %v532_v23 = vld [vmem:[#allocation5 + $0x568] sm:$0xff]  ;;  %v477_v34 = vld [vmem:[#allocation5 + $0x3b0] sm:$0xff] }
  0x5b   : > { %v511_v37 = vld [vmem:[#allocation5 + $0x4c0] sm:$0xff]  ;;  %585 = vmatpush.msra.mxu0 %v383_v36  ;;  %677 = vmatpush.msrb.mxu3 %v384_v47  ;;  %v2857_v26 = vld [vmem:[%s2812_s11 + $0x28] sm:$0xff] }
  0x5c   : > { %v447_v38 = vld [vmem:[#allocation5 + $0x2c0] sm:$0xff]  ;;  %631 = vmatpush.msra.mxu2 %v511_v37  ;;  %v460_v27 = vld [vmem:[#allocation5 + $0x328] sm:$0xff]  ;;  %v401_v37 = vld [vmem:[#allocation5 + $0x150] sm:$0xff] }
  0x5d   : > { %v379_v40 = vld [vmem:[#allocation5 + $0xa0] sm:$0xff]  ;;  %608 = vmatpush.msra.mxu1 %v447_v38  ;;  %678 = vmatpush.msrb.mxu3 %v380_v51  ;;  %v528_v28 = vld [vmem:[#allocation5 + $0x548] sm:$0xff]  ;;  %v473_v38 = vld [vmem:[#allocation5 + $0x390] sm:$0xff] }
  0x5e   : > { %v507_v41 = vld [vmem:[#allocation5 + $0x4a0] sm:$0xff]  ;;  %586 = vmatpush.msra.mxu0 %v379_v40  ;;  %v456_v31 = vld [vmem:[#allocation5 + $0x308] sm:$0xff] }
  0x5f   : > { %v443_v42 = vld [vmem:[#allocation5 + $0x2a0] sm:$0xff]  ;;  %632 = vmatpush.msra.mxu2 %v507_v41  ;;  %679 = vmatpush.msrb.mxu3 %v376_v55  ;;  %v524_v32 = vld [vmem:[#allocation5 + $0x528] sm:$0xff]  ;;  %v397_v41 = vld [vmem:[#allocation5 + $0x130] sm:$0xff] }
  0x60   : > { %v375_v44 = vld [vmem:[#allocation5 + $0x80] sm:$0xff]  ;;  %609 = vmatpush.msra.mxu1 %v443_v42  ;;  %v452_v35 = vld [vmem:[#allocation5 + $0x2e8] sm:$0xff]  ;;  %v469_v42 = vld [vmem:[#allocation5 + $0x370] sm:$0xff] }
  0x61   : > { %v503_v45 = vld [vmem:[#allocation5 + $0x480] sm:$0xff]  ;;  %587 = vmatpush.msra.mxu0 %v375_v44  ;;  %680 = vmatpush.msrb.mxu3 %v372_v59  ;;  %v520_v36 = vld [vmem:[#allocation5 + $0x508] sm:$0xff] }
  0x62   : > { %v439_v46 = vld [vmem:[#allocation5 + $0x280] sm:$0xff]  ;;  %633 = vmatpush.msra.mxu2 %v503_v45  ;;  %v448_v39 = vld [vmem:[#allocation5 + $0x2c8] sm:$0xff]  ;;  %v393_v45 = vld [vmem:[#allocation5 + $0x110] sm:$0xff] }
  0x63   : > { %v371_v48 = vld [vmem:[#allocation5 + $0x60] sm:$0xff]  ;;  %610 = vmatpush.msra.mxu1 %v439_v46  ;;  %681 = vmatpush.msrb.mxu3 %v368_v1  ;;  %v516_v40 = vld [vmem:[#allocation5 + $0x4e8] sm:$0xff]  ;;  %v465_v46 = vld [vmem:[#allocation5 + $0x350] sm:$0xff] }
  0x64   : > { %v499_v49 = vld [vmem:[#allocation5 + $0x460] sm:$0xff]  ;;  %588 = vmatpush.msra.mxu0 %v371_v48  ;;  %v444_v43 = vld [vmem:[#allocation5 + $0x2a8] sm:$0xff] }
  0x65   : > { %v435_v50 = vld [vmem:[#allocation5 + $0x260] sm:$0xff]  ;;  %634 = vmatpush.msra.mxu2 %v499_v49  ;;  %682 = vmatpush.msrb.mxu3 %v364_v6  ;;  %v512_v44 = vld [vmem:[#allocation5 + $0x4c8] sm:$0xff]  ;;  %v389_v49 = vld [vmem:[#allocation5 + $0xf0] sm:$0xff] }
  0x66   : > { %v367_v52 = vld [vmem:[#allocation5 + $0x40] sm:$0xff]  ;;  %611 = vmatpush.msra.mxu1 %v435_v50  ;;  %v440_v47 = vld [vmem:[#allocation5 + $0x288] sm:$0xff]  ;;  %v461_v50 = vld [vmem:[#allocation5 + $0x330] sm:$0xff] }
  0x67   : > { %v495_v53 = vld [vmem:[#allocation5 + $0x440] sm:$0xff]  ;;  %589 = vmatpush.msra.mxu0 %v367_v52  ;;  %683 = vmatpush.msrb.mxu3 %v360_v10  ;;  %v508_v48 = vld [vmem:[#allocation5 + $0x4a8] sm:$0xff]  ;;  %v441_v10 = vld [vmem:[#allocation5 + $0x290] sm:$0xff] }
  0x68   : > { %v431_v54 = vld [vmem:[#allocation5 + $0x240] sm:$0xff]  ;;  %635 = vmatpush.msra.mxu2 %v495_v53  ;;  %v436_v51 = vld [vmem:[#allocation5 + $0x268] sm:$0xff]  ;;  %v385_v53 = vld [vmem:[#allocation5 + $0xd0] sm:$0xff] }
  0x69   : > { %v363_v56 = vld [vmem:[#allocation5 + $0x20] sm:$0xff]  ;;  %612 = vmatpush.msra.mxu1 %v431_v54  ;;  %760 = vmatpush.msra.mxu3 %v421_v14  ;;  %v504_v52 = vld [vmem:[#allocation5 + $0x488] sm:$0xff]  ;;  %v457_v54 = vld [vmem:[#allocation5 + $0x310] sm:$0xff] }
  0x6a   : > { %v491_v57 = vld [vmem:[#allocation5 + $0x420] sm:$0xff]  ;;  %590 = vmatpush.msra.mxu0 %v363_v56  ;;  %v432_v55 = vld [vmem:[#allocation5 + $0x248] sm:$0xff]  ;;  %v557_v14 = vld [vmem:[#allocation5 + $0x630] sm:$0xff] }
  0x6b   : > { %v427_v58 = vld [vmem:[#allocation5 + $0x220] sm:$0xff]  ;;  %636 = vmatpush.msra.mxu2 %v491_v57  ;;  %761 = vmatpush.msra.mxu3 %v417_v18  ;;  %v500_v56 = vld [vmem:[#allocation5 + $0x468] sm:$0xff]  ;;  %v381_v57 = vld [vmem:[#allocation5 + $0xb0] sm:$0xff] }
  0x6c   : > { %v359_v60 = vld [vmem:[#allocation5] sm:$0xff]  ;;  %613 = vmatpush.msra.mxu1 %v427_v58  ;;  %v453_v58 = vld [vmem:[#allocation5 + $0x2f0] sm:$0xff]  ;;  %v428_v59 = vld [vmem:[#allocation5 + $0x228] sm:$0xff] }
  0x6d   : > { %v487_v61 = vld [vmem:[#allocation5 + $0x400] sm:$0xff]  ;;  %591 = vmatpush.msra.mxu0 %v359_v60  ;;  %762 = vmatpush.msra.mxu3 %v413_v24  ;;  %v496_v60 = vld [vmem:[#allocation5 + $0x448] sm:$0xff]  ;;  %v433_v18 = vld [vmem:[#allocation5 + $0x250] sm:$0xff] }
  0x6e   : > { %v423_v0 = vld [vmem:[#allocation5 + $0x200] sm:$0xff]  ;;  %637 = vmatpush.msra.mxu2 %v487_v61  ;;  %v377_v61 = vld [vmem:[#allocation5 + $0x90] sm:$0xff]  ;;  %v492_v1 = vld [vmem:[#allocation5 + $0x428] sm:$0xff] }
  0x6f   : > { %v2830_v2 = vld [vmem:[%s2812_s11] sm:$0xff]  ;;  %638 = vmatmul.f32.vlgmr.msra.gmra.mxu2 %v2827_v62  ;;  %691 = vmatpush.msrb.mxu0 %v484_v63  ;;  %v449_v63 = vld [vmem:[#allocation5 + $0x2d0] sm:$0xff]  ;;  %v488_v6 = vld [vmem:[#allocation5 + $0x408] sm:$0xff] }
  0x70   : > { %614 = vmatpush.msra.mxu1 %v423_v0  ;;  %592 = vmatmul.f32.vlgmr.msra.gmra.mxu0 %v2830_v2  ;;  %v2848_v20 = vld [vmem:[%s2812_s11 + $0x20] sm:$0xff]  ;;  %v424_v0 = vld [vmem:[#allocation5 + $0x208] sm:$0xff]  ;;  %v533_v24 = vld [vmem:[#allocation5 + $0x570] sm:$0xff] }
  0x71   : > { %692 = vmatpush.msrb.mxu0 %v480_v4  ;;  %615 = vmatmul.f32.vlgmr.msra.gmra.mxu1 %v2837_v7  ;;  %v373_v4 = vld [vmem:[#allocation5 + $0x70] sm:$0xff] }
  0x72   : > { %714 = vmatpush.msrb.mxu1 %v548_v5  ;;  %751 = vmatpush.msrb.mxu2 %v556_v11  ;;  %v445_v5 = vld [vmem:[#allocation5 + $0x2b0] sm:$0xff] }
  0x73   : > { %693 = vmatpush.msrb.mxu0 %v476_v8  ;;  %763 = vmatpush.msra.mxu3 %v409_v29  ;;  %v549_v8 = vld [vmem:[#allocation5 + $0x5f0] sm:$0xff]  ;;  %v414_v29 = vld [vmem:[#allocation5 + $0x1b8] sm:$0xff] }
  0x74   : > { %715 = vmatpush.msrb.mxu1 %v544_v9  ;;  %752 = vmatpush.msrb.mxu2 %v552_v19  ;;  %v369_v9 = vld [vmem:[#allocation5 + $0x50] sm:$0xff]  ;;  %v422_v19 = vld [vmem:[#allocation5 + $0x1f8] sm:$0xff] }
  0x75   : > { %694 = vmatpush.msrb.mxu0 %v472_v12  ;;  %764 = vmatpush.msra.mxu3 %v405_v33  ;;  %v545_v11 = vld [vmem:[#allocation5 + $0x5d0] sm:$0xff]  ;;  %v410_v33 = vld [vmem:[#allocation5 + $0x198] sm:$0xff] }
  0x76   : > { %716 = vmatpush.msrb.mxu1 %v540_v13  ;;  %783 = vmatpush.msra.mxu2 %v485_v25  ;;  %v365_v12 = vld [vmem:[#allocation5 + $0x30] sm:$0xff]  ;;  %v418_v25 = vld [vmem:[#allocation5 + $0x1d8] sm:$0xff] }
  0x77   : > { %641 = vmatmul.f32.gmra.mxu2 %v2844_v15  ;;  %695 = vmatpush.msrb.mxu0 %v468_v16  ;;  %v437_v13 = vld [vmem:[#allocation5 + $0x270] sm:$0xff] }
  0x78   : > { %717 = vmatpush.msrb.mxu1 %v536_v17  ;;  %595 = vmatmul.f32.gmra.mxu0 %v2848_v20  ;;  %v541_v16 = vld [vmem:[#allocation5 + $0x5b0] sm:$0xff] }
  0x79   : > { %696 = vmatpush.msrb.mxu0 %v464_v22  ;;  %618 = vmatmul.f32.gmra.mxu1 %v2857_v26  ;;  %v361_v17 = vld [vmem:[#allocation5 + $0x10] sm:$0xff] }
  0x7a   : > { %718 = vmatpush.msrb.mxu1 %v532_v23  ;;  %784 = vmatpush.msra.mxu2 %v481_v30  ;;  %v537_v22 = vld [vmem:[#allocation5 + $0x590] sm:$0xff]  ;;  %v550_v30 = vld [vmem:[#allocation5 + $0x5f8] sm:$0xff] }
  0x7b   : > { %697 = vmatpush.msrb.mxu0 %v460_v27  ;;  %765 = vmatpush.msra.mxu3 %v401_v37  ;;  %v429_v23 = vld [vmem:[#allocation5 + $0x230] sm:$0xff]  ;;  %v406_v37 = vld [vmem:[#allocation5 + $0x178] sm:$0xff] }
  0x7c   : > { %719 = vmatpush.msrb.mxu1 %v528_v28  ;;  %785 = vmatpush.msra.mxu2 %v477_v34  ;;  %v425_v27 = vld [vmem:[#allocation5 + $0x210] sm:$0xff]  ;;  %v546_v34 = vld [vmem:[#allocation5 + $0x5d8] sm:$0xff] }
  0x7d   : > { %698 = vmatpush.msrb.mxu0 %v456_v31  ;;  %766 = vmatpush.msra.mxu3 %v397_v41  ;;  %v529_v28 = vld [vmem:[#allocation5 + $0x550] sm:$0xff]  ;;  %v402_v41 = vld [vmem:[#allocation5 + $0x158] sm:$0xff] }
  0x7e   : > { %720 = vmatpush.msrb.mxu1 %v524_v32  ;;  %786 = vmatpush.msra.mxu2 %v473_v38  ;;  %v553_v31 = vld [vmem:[#allocation5 + $0x610] sm:$0xff]  ;;  %v542_v38 = vld [vmem:[#allocation5 + $0x5b8] sm:$0xff] }
  0x7f   : > { %699 = vmatpush.msrb.mxu0 %v452_v35  ;;  %767 = vmatpush.msra.mxu3 %v393_v45  ;;  %v525_v32 = vld [vmem:[#allocation5 + $0x530] sm:$0xff]  ;;  %v486_v35 = vld [vmem:[#allocation5 + $0x3f8] sm:$0xff] }
  0x80   : > { %721 = vmatpush.msrb.mxu1 %v520_v36  ;;  %787 = vmatpush.msra.mxu2 %v469_v42  ;;  %v521_v36 = vld [vmem:[#allocation5 + $0x510] sm:$0xff]  ;;  %v538_v42 = vld [vmem:[#allocation5 + $0x598] sm:$0xff] }
  0x81   : > { %700 = vmatpush.msrb.mxu0 %v448_v39  ;;  %768 = vmatpush.msra.mxu3 %v389_v49  ;;  %v482_v39 = vld [vmem:[#allocation5 + $0x3d8] sm:$0xff] }
  0x82   : > { %722 = vmatpush.msrb.mxu1 %v516_v40  ;;  %788 = vmatpush.msra.mxu2 %v465_v46  ;;  %v517_v40 = vld [vmem:[#allocation5 + $0x4f0] sm:$0xff]  ;;  %v398_v45 = vld [vmem:[#allocation5 + $0x138] sm:$0xff] }
  0x83   : > { %701 = vmatpush.msrb.mxu0 %v444_v43  ;;  %684 = vmatmul.f32.vlgmr.msrb.gmra.mxu3 %v2830_v2  ;;  %v478_v43 = vld [vmem:[#allocation5 + $0x3b8] sm:$0xff] }
  0x84   : > { %723 = vmatpush.msrb.mxu1 %v512_v44  ;;  %789 = vmatpush.msra.mxu2 %v461_v50  ;;  %v513_v44 = vld [vmem:[#allocation5 + $0x4d0] sm:$0xff]  ;;  %v534_v46 = vld [vmem:[#allocation5 + $0x578] sm:$0xff] }
  0x85   : > { %702 = vmatpush.msrb.mxu0 %v440_v47  ;;  %769 = vmatpush.msra.mxu3 %v385_v53  ;;  %v474_v47 = vld [vmem:[#allocation5 + $0x398] sm:$0xff] }
  0x86   : > { %724 = vmatpush.msrb.mxu1 %v508_v48  ;;  %790 = vmatpush.msra.mxu2 %v457_v54  ;;  %v509_v48 = vld [vmem:[#allocation5 + $0x4b0] sm:$0xff]  ;;  %v394_v49 = vld [vmem:[#allocation5 + $0x118] sm:$0xff] }
  0x87   : > { %703 = vmatpush.msrb.mxu0 %v436_v51  ;;  %770 = vmatpush.msra.mxu3 %v381_v57  ;;  %v530_v50 = vld [vmem:[#allocation5 + $0x558] sm:$0xff]  ;;  %v505_v51 = vld [vmem:[#allocation5 + $0x490] sm:$0xff] }
  0x88   : > { %725 = vmatpush.msrb.mxu1 %v504_v52  ;;  %791 = vmatpush.msra.mxu2 %v453_v58  ;;  %v390_v52 = vld [vmem:[#allocation5 + $0xf8] sm:$0xff] }
  0x89   : > { %704 = vmatpush.msrb.mxu0 %v432_v55  ;;  %771 = vmatpush.msra.mxu3 %v377_v61  ;;  %v470_v53 = vld [vmem:[#allocation5 + $0x378] sm:$0xff]  ;;  %v501_v55 = vld [vmem:[#allocation5 + $0x470] sm:$0xff] }
  0x8a   : > { %726 = vmatpush.msrb.mxu1 %v500_v56  ;;  %792 = vmatpush.msra.mxu2 %v449_v63  ;;  %v526_v54 = vld [vmem:[#allocation5 + $0x538] sm:$0xff] }
  0x8b   : > { %705 = vmatpush.msrb.mxu0 %v428_v59  ;;  %2152 = vmatmul.msk.f32.vlgmr.msrb.gmra.mxu2 %vm569_vm0, %v2833_v3  ;;  %v386_v56 = vld [vmem:[#allocation5 + $0xd8] sm:$0xff]  ;;  %v497_v59 = vld [vmem:[#allocation5 + $0x450] sm:$0xff] }
  0x8c   : > { %727 = vmatpush.msrb.mxu1 %v496_v60  ;;  %772 = vmatpush.msra.mxu3 %v373_v4  ;;  %v466_v57 = vld [vmem:[#allocation5 + $0x358] sm:$0xff] }
  0x8d   : > { %706 = vmatpush.msrb.mxu0 %v424_v0  ;;  %793 = vmatpush.msra.mxu2 %v445_v5  ;;  %v522_v58 = vld [vmem:[#allocation5 + $0x518] sm:$0xff]  ;;  %v493_v0 = vld [vmem:[#allocation5 + $0x430] sm:$0xff] }
  0x8e   : > { %728 = vmatpush.msrb.mxu1 %v492_v1  ;;  %687 = vmatmul.f32.gmra.mxu3 %v2848_v20  ;;  %v382_v60 = vld [vmem:[#allocation5 + $0xb8] sm:$0xff] }
  0x8f   : > { %707 = vmatmul.f32.vlgmr.msrb.gmra.mxu0 %v2837_v7  ;;  %773 = vmatpush.msra.mxu3 %v369_v9  ;;  %v462_v61 = vld [vmem:[#allocation5 + $0x338] sm:$0xff] }
  0x90   : > { %729 = vmatpush.msrb.mxu1 %v488_v6  ;;  %806 = vmatpush.msra.mxu0 %v549_v8  ;;  %v518_v63 = vld [vmem:[#allocation5 + $0x4f8] sm:$0xff]  ;;  %v489_v6 = vld [vmem:[#allocation5 + $0x410] sm:$0xff] }
  0x91   : > { %794 = vmatpush.msra.mxu2 %v441_v10  ;;  %730 = vmatmul.f32.vlgmr.msrb.gmra.mxu1 %v2827_v62  ;;  %v378_v1 = vld [vmem:[#allocation5 + $0x98] sm:$0xff] }
  0x92   : > { %807 = vmatpush.msra.mxu0 %v545_v11  ;;  %774 = vmatpush.msra.mxu3 %v365_v12  ;;  %v458_v4 = vld [vmem:[#allocation5 + $0x318] sm:$0xff] }
  0x93   : > { %795 = vmatpush.msra.mxu2 %v437_v13  ;;  %843 = vmatpush.msra.mxu1 %v557_v14  ;;  %v514_v5 = vld [vmem:[#allocation5 + $0x4d8] sm:$0xff] }
  0x94   : > { %808 = vmatpush.msra.mxu0 %v541_v16  ;;  %775 = vmatpush.msra.mxu3 %v361_v17  ;;  %v374_v8 = vld [vmem:[#allocation5 + $0x78] sm:$0xff] }
  0x95   : > { %796 = vmatpush.msra.mxu2 %v433_v18  ;;  %844 = vmatpush.msra.mxu1 %v553_v31  ;;  %v454_v9 = vld [vmem:[#allocation5 + $0x2f8] sm:$0xff] }
  0x96   : > { %852 = vmatpush.msrb.mxu3 %v422_v19  ;;  %2153 = vmatmul.msk.f32.gmra.mxu2 %vm569_vm0, %v2851_v21  ;;  %v510_v10 = vld [vmem:[#allocation5 + $0x4b8] sm:$0xff] }
  0x97   : > { %809 = vmatpush.msra.mxu0 %v537_v22  ;;  %797 = vmatpush.msra.mxu2 %v429_v23  ;;  %v370_v11 = vld [vmem:[#allocation5 + $0x58] sm:$0xff] }
  0x98   : > { %710 = vmatmul.f32.gmra.mxu0 %v2857_v26  ;;  %853 = vmatpush.msrb.mxu3 %v418_v25  ;;  %v450_v12 = vld [vmem:[#allocation5 + $0x2d8] sm:$0xff] }
  0x99   : > { %810 = vmatpush.msra.mxu0 %v533_v24  ;;  %798 = vmatpush.msra.mxu2 %v425_v27  ;;  %v506_v13 = vld [vmem:[#allocation5 + $0x498] sm:$0xff] }
  0x9a   : > { %733 = vmatmul.f32.gmra.mxu1 %v2844_v15  ;;  %854 = vmatpush.msrb.mxu3 %v414_v29  ;;  %v558_v14 = vld [vmem:[#allocation5 + $0x638] sm:$0xff] }
  0x9b   : > { %811 = vmatpush.msra.mxu0 %v529_v28  ;;  %898 = vmatpush.msrb.mxu2 %v550_v30  ;;  %v366_v16 = vld [vmem:[#allocation5 + $0x38] sm:$0xff] }
  0x9c   : > { %855 = vmatpush.msrb.mxu3 %v410_v33  ;;  %875 = vmatpush.msrb.mxu1 %v486_v35  ;;  %v446_v17 = vld [vmem:[#allocation5 + $0x2b8] sm:$0xff]  ;;  %v2886_v33 = vld [vmem:[#allocation8 + $0xe0] sm:$0xff] }
  0x9d   : > { %812 = vmatpush.msra.mxu0 %v525_v32  ;;  %899 = vmatpush.msrb.mxu2 %v546_v34  ;;  %v502_v18 = vld [vmem:[#allocation5 + $0x478] sm:$0xff]  ;;  %v2888_v34 = vld [vmem:[#allocation8 + $0xe8] sm:$0xff] }
  0x9e   : > { %856 = vmatpush.msrb.mxu3 %v406_v37  ;;  %876 = vmatpush.msrb.mxu1 %v482_v39  ;;  %v362_v19 = vld [vmem:[#allocation5 + $0x18] sm:$0xff]  ;;  %v2898_v37 = vld [vmem:[#allocation8 + $0xc0] sm:$0xff] }
  0x9f   : > { %813 = vmatpush.msra.mxu0 %v521_v36  ;;  %900 = vmatpush.msrb.mxu2 %v542_v38  ;;  %v554_v22 = vld [vmem:[#allocation5 + $0x618] sm:$0xff] }
  0xa0   : > { %857 = vmatpush.msrb.mxu3 %v402_v41  ;;  %877 = vmatpush.msrb.mxu1 %v478_v43  ;;  %v442_v23 = vld [vmem:[#allocation5 + $0x298] sm:$0xff] }
  0xa1   : > { %814 = vmatpush.msra.mxu0 %v517_v40  ;;  %901 = vmatpush.msrb.mxu2 %v538_v42  ;;  %v498_v24 = vld [vmem:[#allocation5 + $0x458] sm:$0xff]  ;;  %v2913_v40 = vld [vmem:[#allocation8 + $0xa0] sm:$0xff]  ;;  %v2931_v42 = vld [vmem:[#allocation8 + $0x88] sm:$0xff] }
  0xa2   : > { %858 = vmatpush.msrb.mxu3 %v398_v45  ;;  %878 = vmatpush.msrb.mxu1 %v474_v47  ;;  %v438_v25 = vld [vmem:[#allocation5 + $0x278] sm:$0xff]  ;;  %v2953_v47 = vld [vmem:[#allocation8 + $0x40] sm:$0xff] }
  0xa3   : > { %815 = vmatpush.msra.mxu0 %v513_v44  ;;  %902 = vmatpush.msrb.mxu2 %v534_v46  ;;  %v494_v27 = vld [vmem:[#allocation5 + $0x438] sm:$0xff]  ;;  %v2941_v44 = vld [vmem:[#allocation8 + $0x60] sm:$0xff] }
  0xa4   : > { %859 = vmatpush.msrb.mxu3 %v394_v49  ;;  %879 = vmatpush.msrb.mxu1 %v470_v53  ;;  %v2877_v28 = vld [vmem:[#allocation8 + $0xf0] sm:$0xff]  ;;  %v2882_v31 = vld [vmem:[#allocation8 + $0xf8] sm:$0xff] }
  0xa5   : > { %816 = vmatpush.msra.mxu0 %v509_v48  ;;  %903 = vmatpush.msrb.mxu2 %v530_v50  ;;  %v434_v29 = vld [vmem:[#allocation5 + $0x258] sm:$0xff]  ;;  %v2965_v50 = vld [vmem:[#allocation8 + $0x20] sm:$0xff] }
  0xa6   : > { %776 = vmatmul.f32.vlgmr.msra.gmra.mxu3 %v2830_v2  ;;  %799 = vmatmul.f32.vlgmr.msra.gmra.mxu2 %v2837_v7  ;;  %v490_v30 = vld [vmem:[#allocation5 + $0x418] sm:$0xff] }
  0xa7   : > { %817 = vmatpush.msra.mxu0 %v505_v51  ;;  %860 = vmatpush.msrb.mxu3 %v390_v52  ;;  %v430_v32 = vld [vmem:[#allocation5 + $0x238] sm:$0xff]  ;;  %v2969_v51 = vld [vmem:[#allocation8 + $0x28] sm:$0xff] }
  0xa8   : > { %904 = vmatpush.msrb.mxu2 %v526_v54  ;;  %880 = vmatpush.msrb.mxu1 %v466_v57  ;;  %v2892_v35 = vld [vmem:[#allocation8 + $0xd0] sm:$0xff]  ;;  %v2896_v36 = vld [vmem:[#allocation8 + $0xd8] sm:$0xff]  ;;  %v2977_v54 = vld [vmem:[#allocation8] sm:$0xff] }
  0xa9   : > { %818 = vmatpush.msra.mxu0 %v501_v55  ;;  %861 = vmatpush.msrb.mxu3 %v386_v56  ;;  %v2905_v38 = vld [vmem:[#allocation8 + $0xb0] sm:$0xff]  ;;  %v2911_v39 = vld [vmem:[#allocation8 + $0xb8] sm:$0xff]  ;;  %v2981_v55 = vld [vmem:[#allocation8 + $0x8] sm:$0xff] }
  0xaa   : > { %905 = vmatpush.msrb.mxu2 %v522_v58  ;;  %881 = vmatpush.msrb.mxu1 %v462_v61  ;;  %v2924_v41 = vld [vmem:[#allocation8 + $0x98] sm:$0xff]  ;;  %v2947_v45 = vld [vmem:[#allocation8 + $0x50] sm:$0xff] }
  0xab   : > { %819 = vmatpush.msra.mxu0 %v497_v59  ;;  %862 = vmatpush.msrb.mxu3 %v382_v60  ;;  %v2939_v43 = vld [vmem:[#allocation8 + $0x78] sm:$0xff]  ;;  %v2959_v48 = vld [vmem:[#allocation8 + $0x30] sm:$0xff] }
  0xac   : > { %906 = vmatpush.msrb.mxu2 %v518_v63  ;;  %882 = vmatpush.msrb.mxu1 %v458_v4  ;;  %v2951_v46 = vld [vmem:[#allocation8 + $0x58] sm:$0xff]  ;;  %v2971_v52 = vld [vmem:[#allocation8 + $0x10] sm:$0xff] }
  0xad   : > { %820 = vmatpush.msra.mxu0 %v493_v0  ;;  %863 = vmatpush.msrb.mxu3 %v378_v1  ;;  %v2963_v49 = vld [vmem:[#allocation8 + $0x38] sm:$0xff] }
  0xae   : > { %907 = vmatpush.msrb.mxu2 %v514_v5  ;;  %779 = vmatmul.f32.gmra.mxu3 %v2848_v20  ;;  %v2975_v53 = vld [vmem:[#allocation8 + $0x18] sm:$0xff] }
  0xaf   : > { %2154 = vmatmul.msk.f32.vlgmr.msra.gmra.mxu1 %vm569_vm0, %v2833_v3  ;;  %821 = vmatpush.msra.mxu0 %v489_v6  ;;  %v2997_v56 = vld [vmem:[#allocation7] sm:$0xf] }
  0xb0   : > { %864 = vmatpush.msrb.mxu3 %v374_v8  ;;  %883 = vmatpush.msrb.mxu1 %v454_v9  ;;  %v561_v57 = vperm.slane %v2997_v56, 0 }
  0xb1   : > { %908 = vmatpush.msrb.mxu2 %v510_v10  ;;  %822 = vmatmul.f32.vlgmr.msra.gmra.mxu0 %v2827_v62 }
  0xb2   : > { %802 = vmatmul.f32.gmra.mxu2 %v2857_v26  ;;  %865 = vmatpush.msrb.mxu3 %v370_v11 }
  0xb3   : > { %884 = vmatpush.msrb.mxu1 %v450_v12  ;;  %909 = vmatpush.msrb.mxu2 %v506_v13 }
  0xb4   : > { %935 = vmatpush.msrb.mxu0 %v558_v14  ;;  %866 = vmatpush.msrb.mxu3 %v366_v16  ;;  %v562_v14 = vperm.slane %v2997_v56, 1 }
  0xb5   : > { %885 = vmatpush.msrb.mxu1 %v446_v17  ;;  %910 = vmatpush.msrb.mxu2 %v502_v18 }
  0xb6   : > { %867 = vmatpush.msrb.mxu3 %v362_v19  ;;  %936 = vmatpush.msrb.mxu0 %v554_v22 }
  0xb7   : > { %886 = vmatpush.msrb.mxu1 %v442_v23  ;;  %911 = vmatpush.msrb.mxu2 %v498_v24 }
  0xb8   : > { %2155 = vmatmul.msk.f32.gmra.mxu1 %vm569_vm0, %v2851_v21  ;;  %868 = vmatmul.f32.vlgmr.msrb.gmra.mxu3 %v2830_v2  ;;  %v426_v2 = vld [vmem:[#allocation5 + $0x218] sm:$0xff] }
  0xb9   : > { %887 = vmatpush.msrb.mxu1 %v438_v25  ;;  %912 = vmatpush.msrb.mxu2 %v494_v27 }
  0xba   : > { %825 = vmatmul.f32.gmra.mxu0 %v2844_v15  ;;  %1008 = vmatpush.msra.mxu3 %v2877_v28 }
  0xbb   : > { %888 = vmatpush.msrb.mxu1 %v434_v29  ;;  %913 = vmatpush.msrb.mxu2 %v490_v30 }
  0xbc   : > { %914 = vmatmul.f32.vlgmr.msrb.gmra.mxu2 %v2827_v62  ;;  %1031 = vmatpush.msra.mxu0 %v2882_v31  ;;  %v2903_v62 = vld [vmem:[#allocation8 + $0xc8] sm:$0xff] }
  0xbd   : > { %889 = vmatpush.msrb.mxu1 %v430_v32  ;;  %1009 = vmatpush.msra.mxu3 %v2886_v33 }
  0xbe   : > { %1032 = vmatpush.msra.mxu0 %v2888_v34 }
  0xbf   : > { %890 = vmatpush.msrb.mxu1 %v426_v2  ;;  %1010 = vmatpush.msra.mxu3 %v2892_v35 }
  0xc0   : > { %871 = vmatmul.f32.gmra.mxu3 %v2848_v20  ;;  %891 = vmatmul.f32.vlgmr.msrb.gmra.mxu1 %v2837_v7  ;;  %v2918_v7 = vld [vmem:[#allocation8 + $0xa8] sm:$0xff]  ;;  %v2920_v20 = vld [vmem:[#allocation8 + $0x90] sm:$0xff] }
  0xc1   : > { %1033 = vmatpush.msra.mxu0 %v2896_v36  ;;  %1011 = vmatpush.msra.mxu3 %v2898_v37 }
  0xc2   : > { %2156 = vmatmul.msk.f32.vlgmr.msrb.gmra.mxu0 %vm569_vm0, %v2833_v3  ;;  %v2926_v3 = vld [vmem:[#allocation8 + $0x80] sm:$0xff] }
  0xc3   : > { %1034 = vmatpush.msra.mxu0 %v2903_v62  ;;  %1012 = vmatpush.msra.mxu3 %v2905_v38 }
  0xc4   : > { %917 = vmatmul.f32.gmra.mxu2 %v2844_v15  ;;  %v2933_v15 = vld [vmem:[#allocation8 + $0x70] sm:$0xff] }
  0xc5   : > { %1035 = vmatpush.msra.mxu0 %v2911_v39  ;;  %1013 = vmatpush.msra.mxu3 %v2913_v40 }
  0xc7   : > { %1036 = vmatpush.msra.mxu0 %v2918_v7  ;;  %1014 = vmatpush.msra.mxu3 %v2920_v20 }
  0xc8   : > { %894 = vmatmul.f32.gmra.mxu1 %v2857_v26  ;;  %v2945_v26 = vld [vmem:[#allocation8 + $0x68] sm:$0xff] }
  0xc9   : > { %1037 = vmatpush.msra.mxu0 %v2924_v41  ;;  %1015 = vmatpush.msra.mxu3 %v2926_v3 }
  0xca   : > { %2157 = vmatmul.msk.f32.gmra.mxu0 %vm569_vm0, %v2851_v21  ;;  %v2957_v21 = vld [vmem:[#allocation8 + $0x48] sm:$0xff] }
  0xcb   : > { %1038 = vmatpush.msra.mxu0 %v2931_v42  ;;  %1016 = vmatpush.msra.mxu3 %v2933_v15  ;;  %v662_v1 = vpop.f32.mrf.mxu3 }
  0xcd   : > { %1039 = vmatpush.msra.mxu0 %v2939_v43  ;;  %1017 = vmatpush.msra.mxu3 %v2941_v44 }
  0xcf   : > { %1040 = vmatpush.msra.mxu0 %v2945_v26  ;;  %1018 = vmatpush.msra.mxu3 %v2947_v45 }
  0xd1   : > { %1041 = vmatpush.msra.mxu0 %v2951_v46  ;;  %1019 = vmatpush.msra.mxu3 %v2953_v47 }
  0xd3   : > { %1042 = vmatpush.msra.mxu0 %v2957_v21  ;;  %1020 = vmatpush.msra.mxu3 %v2959_v48 }
  0xd5   : > { %1043 = vmatpush.msra.mxu0 %v2963_v49  ;;  %1021 = vmatpush.msra.mxu3 %v2965_v50  ;;  %v665_v12 = vpop.f32.mrf.mxu3 }
  0xd7   : > { %1044 = vmatpush.msra.mxu0 %v2969_v51  ;;  %1022 = vmatpush.msra.mxu3 %v2971_v52 }
  0xd9   : > { %1045 = vmatpush.msra.mxu0 %v2975_v53  ;;  %1023 = vmatpush.msra.mxu3 %v2977_v54 }
  0xdb   : > { %1230 = vmatpush.msrb.mxu3 %v2877_v28  ;;  %1046 = vmatpush.msra.mxu0 %v2981_v55 }
  0xdd   : > { %1253 = vmatpush.msrb.mxu0 %v2882_v31  ;;  %1231 = vmatpush.msrb.mxu3 %v2886_v33 }
  0xdf   : > { %1254 = vmatpush.msrb.mxu0 %v2888_v34  ;;  %1232 = vmatpush.msrb.mxu3 %v2892_v35 }
  0xe1   : > { %1255 = vmatpush.msrb.mxu0 %v2896_v36  ;;  %1233 = vmatpush.msrb.mxu3 %v2898_v37 }
  0xe3   : > { %1256 = vmatpush.msrb.mxu0 %v2903_v62  ;;  %1234 = vmatpush.msrb.mxu3 %v2905_v38 }
  0xe5   : > { %1257 = vmatpush.msrb.mxu0 %v2911_v39  ;;  %1235 = vmatpush.msrb.mxu3 %v2913_v40 }
  0xe7   : > { %1258 = vmatpush.msrb.mxu0 %v2918_v7  ;;  %1236 = vmatpush.msrb.mxu3 %v2920_v20 }
  0xe9   : > { %1259 = vmatpush.msrb.mxu0 %v2924_v41  ;;  %1237 = vmatpush.msrb.mxu3 %v2926_v3 }
  0xeb   : > { %1260 = vmatpush.msrb.mxu0 %v2931_v42  ;;  %1238 = vmatpush.msrb.mxu3 %v2933_v15 }
  0xed   : > { %v593_v58 = vpop.f32.mrf.mxu0  ;;  %1261 = vmatpush.msrb.mxu0 %v2939_v43  ;;  %1239 = vmatpush.msrb.mxu3 %v2941_v44 }
  0xee   : > { %v594_v59 = vadd.f32 %v593_v58, %v561_v57  ;;  %v616_v60 = vpop.f32.mrf.mxu1 }
  0xef   : > { %1262 = vmatpush.msrb.mxu0 %v2945_v26  ;;  %1240 = vmatpush.msrb.mxu3 %v2947_v45 }
  0xf0   : > { %v617_v61 = vadd.f32 %v616_v60, %v594_v59 }
  0xf1   : > { %1263 = vmatpush.msrb.mxu0 %v2951_v46  ;;  %1241 = vmatpush.msrb.mxu3 %v2953_v47 }
  0xf2   : > { %v639_v63 = vpop.f32.mrf.mxu2 }
  0xf3   : > { %v640_v0 = vadd.f32 %v639_v63, %v617_v61  ;;  %1264 = vmatpush.msrb.mxu0 %v2957_v21  ;;  %1242 = vmatpush.msrb.mxu3 %v2959_v48 }
  0xf5   : > { %v663_v4 = vadd.f32 %v662_v1, %v640_v0  ;;  %v596_v5 = vpop.f32.mrf.mxu0  ;;  %1265 = vmatpush.msrb.mxu0 %v2963_v49  ;;  %1243 = vmatpush.msrb.mxu3 %v2965_v50 }
  0xf6   : > { %v597_v6 = vadd.f32 %v596_v5, %v561_v57  ;;  %v619_v8 = vpop.f32.mrf.mxu1 }
  0xf7   : > { %1024 = vmatmul.f32.vlgmr.msra.gmra.mxu3 %v663_v4  ;;  %1047 = vmatmul.f32.vlgmr.msra.gmra.mxu0 %v663_v4 }
  0xf8   : > { %1266 = vmatpush.msrb.mxu0 %v2969_v51  ;;  %1244 = vmatpush.msrb.mxu3 %v2971_v52  ;;  %v620_v10 = vadd.f32 %v619_v8, %v597_v6 }
  0xfa   : > { %v642_v9 = vpop.f32.mrf.mxu2  ;;  %1267 = vmatpush.msrb.mxu0 %v2975_v53  ;;  %1245 = vmatpush.msrb.mxu3 %v2977_v54 }
  0xfb   : > { %v643_v11 = vadd.f32 %v642_v9, %v620_v10 }
  0xfc   : > { %1454 = vmatpush.msra.mxu3 %v2877_v28  ;;  %1268 = vmatpush.msrb.mxu0 %v2981_v55 }
  0xfd   : > { %v666_v13 = vadd.f32 %v665_v12, %v643_v11 }
  0xfe   : > { %1477 = vmatpush.msra.mxu0 %v2882_v31  ;;  %1455 = vmatpush.msra.mxu3 %v2886_v33 }
  0xff   : > { %1027 = vmatmul.f32.gmra.mxu3 %v666_v13  ;;  %1050 = vmatmul.f32.gmra.mxu0 %v666_v13 }
 0x100   : > { %1478 = vmatpush.msra.mxu0 %v2888_v34  ;;  %1456 = vmatpush.msra.mxu3 %v2892_v35 }
 0x102   : > { %1479 = vmatpush.msra.mxu0 %v2896_v36  ;;  %1457 = vmatpush.msra.mxu3 %v2898_v37 }
 0x104   : > { %1480 = vmatpush.msra.mxu0 %v2903_v62  ;;  %1458 = vmatpush.msra.mxu3 %v2905_v38 }
 0x106   : > { %1481 = vmatpush.msra.mxu0 %v2911_v39  ;;  %1459 = vmatpush.msra.mxu3 %v2913_v40  ;;  %v685_v16 = vpop.f32.mrf.mxu3 }
 0x107   : > { %v686_v17 = vadd.f32 %v685_v16, %v562_v14 }
 0x108   : > { %1482 = vmatpush.msra.mxu0 %v2918_v7  ;;  %1460 = vmatpush.msra.mxu3 %v2920_v20 }
 0x10a   : > { %1483 = vmatpush.msra.mxu0 %v2924_v41  ;;  %1461 = vmatpush.msra.mxu3 %v2926_v3 }
 0x10c   : > { %1484 = vmatpush.msra.mxu0 %v2931_v42  ;;  %1462 = vmatpush.msra.mxu3 %v2933_v15  ;;  %v708_v18 = vpop.f32.mrf.mxu0 }
 0x10d   : > { %v709_v19 = vadd.f32 %v708_v18, %v686_v17 }
 0x10e   : > { %1485 = vmatpush.msra.mxu0 %v2939_v43  ;;  %1463 = vmatpush.msra.mxu3 %v2941_v44  ;;  %v731_v22 = vpop.f32.mrf.mxu1  ;;  %v754_v24 = vpop.f32.mrf.mxu2 }
 0x10f   : > { %v732_v23 = vadd.f32 %v731_v22, %v709_v19 }
 0x110   : > { %1486 = vmatpush.msra.mxu0 %v2945_v26  ;;  %1464 = vmatpush.msra.mxu3 %v2947_v45 }
 0x111   : > { %v755_v25 = vadd.f32 %v754_v24, %v732_v23  ;;  %v688_v27 = vpop.f32.mrf.mxu3 }
 0x112   : > { %1487 = vmatpush.msra.mxu0 %v2951_v46  ;;  %1465 = vmatpush.msra.mxu3 %v2953_v47  ;;  %v689_v29 = vadd.f32 %v688_v27, %v562_v14 }
 0x113   : > { %1246 = vmatmul.f32.vlgmr.msrb.gmra.mxu3 %v755_v25  ;;  %1269 = vmatmul.f32.vlgmr.msrb.gmra.mxu0 %v755_v25 }
 0x114   : > { %1488 = vmatpush.msra.mxu0 %v2957_v21  ;;  %1466 = vmatpush.msra.mxu3 %v2959_v48 }
 0x115   : > { %v711_v30 = vpop.f32.mrf.mxu0 }
 0x116   : > { %1489 = vmatpush.msra.mxu0 %v2963_v49  ;;  %1467 = vmatpush.msra.mxu3 %v2965_v50  ;;  %v712_v32 = vadd.f32 %v711_v30, %v689_v29 }
 0x117   : > { %v734_v2 = vpop.f32.mrf.mxu1 }
 0x118   : > { %1490 = vmatpush.msra.mxu0 %v2969_v51  ;;  %1468 = vmatpush.msra.mxu3 %v2971_v52  ;;  %v735_v57 = vadd.f32 %v734_v2, %v712_v32 }
 0x119   : > { %v757_v58 = vpop.f32.mrf.mxu2 }
 0x11a   : > { %1491 = vmatpush.msra.mxu0 %v2975_v53  ;;  %1469 = vmatpush.msra.mxu3 %v2977_v54  ;;  %v758_v59 = vadd.f32 %v757_v58, %v735_v57 }
 0x11c   : > { %1678 = vmatpush.msrb.mxu3 %v2877_v28  ;;  %1492 = vmatpush.msra.mxu0 %v2981_v55  ;;  %v563_v28 = vperm.slane %v2997_v56, 2 }
 0x11d   : > { %1249 = vmatmul.f32.gmra.mxu3 %v758_v59  ;;  %1272 = vmatmul.f32.gmra.mxu0 %v758_v59 }
 0x11e   : > { %1701 = vmatpush.msrb.mxu0 %v2882_v31  ;;  %1679 = vmatpush.msrb.mxu3 %v2886_v33 }
 0x120   : > { %1702 = vmatpush.msrb.mxu0 %v2888_v34  ;;  %1680 = vmatpush.msrb.mxu3 %v2892_v35 }
 0x122   : > { %1703 = vmatpush.msrb.mxu0 %v2896_v36  ;;  %1681 = vmatpush.msrb.mxu3 %v2898_v37 }
 0x124   : > { %1704 = vmatpush.msrb.mxu0 %v2903_v62  ;;  %1682 = vmatpush.msrb.mxu3 %v2905_v38 }
 0x126   : > { %1705 = vmatpush.msrb.mxu0 %v2911_v39  ;;  %1683 = vmatpush.msrb.mxu3 %v2913_v40 }
 0x128   : > { %1706 = vmatpush.msrb.mxu0 %v2918_v7  ;;  %1684 = vmatpush.msrb.mxu3 %v2920_v20 }
 0x129   : > { %v777_v31 = vpop.f32.mrf.mxu3  ;;  %v800_v34 = vpop.f32.mrf.mxu2 }
 0x12a   : > { %1707 = vmatpush.msrb.mxu0 %v2924_v41  ;;  %1685 = vmatpush.msrb.mxu3 %v2926_v3  ;;  %v778_v33 = vadd.f32 %v777_v31, %v563_v28 }
 0x12c   : > { %1708 = vmatpush.msrb.mxu0 %v2931_v42  ;;  %1686 = vmatpush.msrb.mxu3 %v2933_v15  ;;  %v801_v35 = vadd.f32 %v800_v34, %v778_v33  ;;  %v846_v36 = vpop.f32.mrf.mxu1  ;;  %v564_v15 = vperm.slane %v2997_v56, 3 }
 0x12e   : > { %1709 = vmatpush.msrb.mxu0 %v2939_v43  ;;  %1687 = vmatpush.msrb.mxu3 %v2941_v44  ;;  %v823_v37 = vpop.f32.mrf.mxu0 }
 0x12f   : > { %v824_v62 = vadd.f32 %v823_v37, %v801_v35 }
 0x130   : > { %1710 = vmatpush.msrb.mxu0 %v2945_v26  ;;  %1688 = vmatpush.msrb.mxu3 %v2947_v45 }
 0x131   : > { %v847_v38 = vadd.f32 %v846_v36, %v824_v62  ;;  %v780_v39 = vpop.f32.mrf.mxu3 }
 0x132   : > { %1711 = vmatpush.msrb.mxu0 %v2951_v46  ;;  %1689 = vmatpush.msrb.mxu3 %v2953_v47  ;;  %v781_v40 = vadd.f32 %v780_v39, %v563_v28 }
 0x133   : > { %1470 = vmatmul.f32.vlgmr.msra.gmra.mxu3 %v847_v38  ;;  %1493 = vmatmul.f32.vlgmr.msra.gmra.mxu0 %v847_v38 }
 0x134   : > { %1712 = vmatpush.msrb.mxu0 %v2957_v21  ;;  %1690 = vmatpush.msrb.mxu3 %v2959_v48 }
 0x135   : > { %v803_v7 = vpop.f32.mrf.mxu2  ;;  %v849_v20 = vpop.f32.mrf.mxu1 }
 0x136   : > { %1713 = vmatpush.msrb.mxu0 %v2963_v49  ;;  %1691 = vmatpush.msrb.mxu3 %v2965_v50  ;;  %v804_v41 = vadd.f32 %v803_v7, %v781_v40 }
 0x137   : > { %v826_v3 = vpop.f32.mrf.mxu0 }
 0x138   : > { %1714 = vmatpush.msrb.mxu0 %v2969_v51  ;;  %1692 = vmatpush.msrb.mxu3 %v2971_v52  ;;  %v827_v42 = vadd.f32 %v826_v3, %v804_v41 }
 0x13a   : > { %1715 = vmatpush.msrb.mxu0 %v2975_v53  ;;  %1693 = vmatpush.msrb.mxu3 %v2977_v54  ;;  %v850_v43 = vadd.f32 %v849_v20, %v827_v42 }
 0x13b   : > { %v869_v44 = vpop.f32.mrf.mxu3 }
 0x13c   : > { %1716 = vmatpush.msrb.mxu0 %v2981_v55  ;;  %v870_v26 = vadd.f32 %v869_v44, %v564_v15  ;;  %1473 = vmatmul.f32.gmra.mxu3 %v850_v43 }
 0x13d   : > { %1496 = vmatmul.f32.gmra.mxu0 %v850_v43  ;;  %v892_v45 = vpop.f32.mrf.mxu1 }
 0x13e   : > { %v893_v46 = vadd.f32 %v892_v45, %v870_v26 }
 0x13f   : > { %v915_v47 = vpop.f32.mrf.mxu2  ;;  %v938_v21 = vpop.f32.mrf.mxu0 }
 0x140   : > { %v916_v48 = vadd.f32 %v915_v47, %v893_v46 }
 0x142   : > { %v939_v49 = vadd.f32 %v938_v21, %v916_v48 }
 0x143   : > { %v872_v50 = vpop.f32.mrf.mxu3 }
 0x144   : > { %v873_v51 = vadd.f32 %v872_v50, %v564_v15  ;;  %1694 = vmatmul.f32.vlgmr.msrb.gmra.mxu3 %v939_v49 }
 0x145   : > { %1717 = vmatmul.f32.vlgmr.msrb.gmra.mxu0 %v939_v49  ;;  %v895_v52 = vpop.f32.mrf.mxu1 }
 0x146   : > { %v896_v53 = vadd.f32 %v895_v52, %v873_v51 }
 0x147   : > { %v918_v54 = vpop.f32.mrf.mxu2  ;;  %v941_v56 = vpop.f32.mrf.mxu0 }
 0x148   : > { %v919_v60 = vadd.f32 %v918_v54, %v896_v53 }
 0x14a   : > { %v942_v55 = vadd.f32 %v941_v56, %v919_v60 }
 0x14c   : > { %1697 = vmatmul.f32.gmra.mxu3 %v942_v55 }
 0x14d   : > { %1720 = vmatmul.f32.gmra.mxu0 %v942_v55 }
 0x174   : > { %v1048_v61 = vpop.f32.mrf.mxu0 }
 0x17a   : > { %v1025_v63 = vpop.f32.mrf.mxu3 }
 0x17b   : > { %v1054_v0 = vmax.f32 %v1025_v63, %v1048_v61 }
 0x17c   : > { %v1051_v1 = vpop.f32.mrf.mxu0 }
 0x17d   : > { %1055 = vmax.xlane.f32.xlu0 %v1054_v0 }
 0x182   : > { %v1028_v4 = vpop.f32.mrf.mxu3 }
 0x183   : > { %v1057_v5 = vmax.f32 %v1028_v4, %v1051_v1 }
 0x185   : > { %1058 = vmax.xlane.f32.xlu0 %v1057_v5 }
 0x190   : > { %v1270_v6 = vpop.f32.mrf.mxu0 }
 0x196   : > { %v1247_v8 = vpop.f32.mrf.mxu3 }
 0x197   : > { %v1276_v9 = vmax.f32 %v1247_v8, %v1270_v6 }
 0x199   : > { %1277 = vmax.xlane.f32.xlu1 %v1276_v9 }
 0x19a   : > { %v1273_v10 = vpop.f32.mrf.mxu0 }
 0x1a0   : > { %v1250_v11 = vpop.f32.mrf.mxu3 }
 0x1a1   : > { %v1279_v12 = vmax.f32 %v1250_v11, %v1273_v10 }
 0x1a3   : > { %1280 = vmax.xlane.f32.xlu1 %v1279_v12 }
 0x1b0   : > { %v3088_v13 = vpop.f32.mrf.mxu0 }
 0x1b6   : > { %v1471_v14 = vpop.f32.mrf.mxu3 }
 0x1b7   : > { %v1500_v16 = vmax.f32 %v1471_v14, %v3088_v13 }
 0x1b9   : > { %1501 = vmax.xlane.f32.xlu2 %v1500_v16 }
 0x1ba   : > { %v3091_v17 = vpop.f32.mrf.mxu0 }
 0x1bf   : > { %v3093_v18 = vpop.f32.mrf.mxu3 }
 0x1c0   : > { %v1503_v19 = vmax.f32 %v3093_v18, %v3091_v17 }
 0x1c2   : > { %1504 = vmax.xlane.f32.xlu2 %v1503_v19  ;;  %v3097_v22 = vpop.f32.mrf.mxu0 }
 0x1c7   : > { %v3099_v23 = vpop.f32.mrf.mxu3 }
 0x1c8   : > { %v1724_v24 = vmax.f32 %v3099_v23, %v3097_v22 }
 0x1ca   : > { %1725 = vmax.xlane.f32.xlu0 %v1724_v24  ;;  %v3103_v25 = vpop.f32.mrf.mxu0 }
 0x1cf   : > { %v3105_v27 = vpop.f32.mrf.mxu3 }
 0x1d0   : > { %v1727_v29 = vmax.f32 %v3105_v27, %v3103_v25 }
 0x1d2   : > { %1728 = vmax.xlane.f32.xlu2 %v1727_v29 }
 0x1f0   : > { %v1056_v30 = vpop.xlane.xlu0 %1055 }
 0x1f1   : > { %v1060_v32 = vsub.f32 %v1025_v63, %v1056_v30  ;;  %v1061_v2 = vsub.f32 %v1048_v61, %v1056_v30 }
 0x1f3   : > { %v1064_v57 = vmul.f32 1.442695, %v1060_v32  ;;  %v1066_v58 = vmul.f32 1.442695, %v1061_v2 }
 0x1f5   : > { %2330 = vpow2.f32 %v1064_v57 }
 0x1f6   : > { %2332 = vpow2.f32 %v1066_v58 }
 0x1f8   : > { %v1059_v59 = vpop.xlane.xlu0 %1058 }
 0x1f9   : > { %v1062_v31 = vsub.f32 %v1028_v4, %v1059_v59  ;;  %v1063_v33 = vsub.f32 %v1051_v1, %v1059_v59 }
 0x1fb   : > { %v3109_v28 = vpop.eup %2330  ;;  %v1068_v35 = vmul.f32 1.442695, %v1062_v31  ;;  %v1070_v36 = vmul.f32 1.442695, %v1063_v33 }
 0x1fc   : > { %v3111_v34 = vpop.eup %2332 }
 0x1fd   : > { %v1072_v37 = vadd.f32 %v3111_v34, %v3109_v28  ;;  %2334 = vpow2.f32 %v1068_v35 }
 0x1fe   : > { %2336 = vpow2.f32 %v1070_v36 }
 0x1ff   : > { %1073 = vadd.xlane.f32.xlu1 %v1072_v37 }
 0x203   : > { %v3115_v62 = vpop.eup %2334 }
 0x204   : > { %v3117_v38 = vpop.eup %2336 }
 0x205   : > { %v1075_v39 = vadd.f32 %v3117_v38, %v3115_v62 }
 0x207   : > { %1076 = vadd.xlane.f32.xlu0 %v1075_v39 }
 0x20c   : > { %v1278_v40 = vpop.xlane.xlu1 %1277 }
 0x20d   : > { %v1282_v7 = vsub.f32 %v1247_v8, %v1278_v40  ;;  %v1283_v20 = vsub.f32 %v1270_v6, %v1278_v40 }
 0x20f   : > { %v1286_v41 = vmul.f32 1.442695, %v1282_v7  ;;  %v1288_v3 = vmul.f32 1.442695, %v1283_v20 }
 0x211   : > { %2338 = vpow2.f32 %v1286_v41 }
 0x212   : > { %2340 = vpow2.f32 %v1288_v3 }
 0x216   : > { %v1281_v42 = vpop.xlane.xlu1 %1280 }
 0x217   : > { %v1284_v15 = vsub.f32 %v1250_v11, %v1281_v42  ;;  %v1285_v43 = vsub.f32 %v1273_v10, %v1281_v42  ;;  %v3121_v44 = vpop.eup %2338 }
 0x218   : > { %v3123_v26 = vpop.eup %2340 }
 0x219   : > { %v1290_v45 = vmul.f32 1.442695, %v1284_v15  ;;  %v1292_v46 = vmul.f32 1.442695, %v1285_v43  ;;  %v1294_v47 = vadd.f32 %v3123_v26, %v3121_v44 }
 0x21b   : > { %2342 = vpow2.f32 %v1290_v45  ;;  %1295 = vadd.xlane.f32.xlu1 %v1294_v47 }
 0x21c   : > { %2344 = vpow2.f32 %v1292_v46 }
 0x221   : > { %v3127_v21 = vpop.eup %2342 }
 0x222   : > { %v3129_v48 = vpop.eup %2344 }
 0x223   : > { %v1297_v49 = vadd.f32 %v3129_v48, %v3127_v21 }
 0x225   : > { %1298 = vadd.xlane.f32.xlu2 %v1297_v49 }
 0x22c   : > { %v1502_v50 = vpop.xlane.xlu2 %1501 }
 0x22d   : > { %v1506_v51 = vsub.f32 %v1471_v14, %v1502_v50  ;;  %v1507_v52 = vsub.f32 %v3088_v13, %v1502_v50 }
 0x22f   : > { %v1510_v53 = vmul.f32 1.442695, %v1506_v51  ;;  %v1512_v54 = vmul.f32 1.442695, %v1507_v52 }
 0x231   : > { %2346 = vpow2.f32 %v1510_v53 }
 0x232   : > { %2348 = vpow2.f32 %v1512_v54 }
 0x235   : > { %v1505_v56 = vpop.xlane.xlu2 %1504 }
 0x236   : > { %v1508_v60 = vsub.f32 %v3093_v18, %v1505_v56  ;;  %v1509_v55 = vsub.f32 %v3091_v17, %v1505_v56 }
 0x237   : > { %v3136_v61 = vpop.eup %2346 }
 0x238   : > { %v3138_v63 = vpop.eup %2348  ;;  %v1514_v0 = vmul.f32 1.442695, %v1508_v60  ;;  %v1516_v1 = vmul.f32 1.442695, %v1509_v55 }
 0x239   : > { %v1518_v4 = vadd.f32 %v3138_v63, %v3136_v61 }
 0x23a   : > { %2350 = vpow2.f32 %v1514_v0 }
 0x23b   : > { %2352 = vpow2.f32 %v1516_v1  ;;  %1519 = vadd.xlane.f32.xlu0 %v1518_v4 }
 0x23d   : > { %v1726_v5 = vpop.xlane.xlu0 %1725 }
 0x23e   : > { %v1730_v6 = vsub.f32 %v3099_v23, %v1726_v5  ;;  %v1731_v8 = vsub.f32 %v3097_v22, %v1726_v5 }
 0x240   : > { %v3144_v9 = vpop.eup %2350  ;;  %v1734_v10 = vmul.f32 1.442695, %v1730_v6  ;;  %v1736_v11 = vmul.f32 1.442695, %v1731_v8 }
 0x241   : > { %v3146_v12 = vpop.eup %2352 }
 0x242   : > { %2354 = vpow2.f32 %v1734_v10  ;;  %v1521_v13 = vadd.f32 %v3146_v12, %v3144_v9 }
 0x243   : > { %2356 = vpow2.f32 %v1736_v11 }
 0x244   : > { %1522 = vadd.xlane.f32.xlu1 %v1521_v13 }
 0x245   : > { %v1729_v14 = vpop.xlane.xlu2 %1728 }
 0x246   : > { %v1732_v16 = vsub.f32 %v3105_v27, %v1729_v14  ;;  %v1733_v17 = vsub.f32 %v3103_v25, %v1729_v14 }
 0x248   : > { %v3152_v18 = vpop.eup %2354  ;;  %v1738_v19 = vmul.f32 1.442695, %v1732_v16  ;;  %v1740_v22 = vmul.f32 1.442695, %v1733_v17 }
 0x249   : > { %v3154_v23 = vpop.eup %2356 }
 0x24a   : > { %2358 = vpow2.f32 %v1738_v19  ;;  %v1742_v24 = vadd.f32 %v3154_v23, %v3152_v18 }
 0x24b   : > { %2360 = vpow2.f32 %v1740_v22 }
 0x24c   : > { %1743 = vadd.xlane.f32.xlu2 %v1742_v24 }
 0x250   : > { %v3158_v29 = vpop.eup %2358 }
 0x251   : > { %v3160_v30 = vpop.eup %2360 }
 0x252   : > { %v1745_v27 = vadd.f32 %v3160_v30, %v3158_v29 }
 0x254   : > { %1746 = vadd.xlane.f32.xlu0 %v1745_v27 }
 0x272   : > { %v1074_v25 = vpop.xlane.xlu1 %1073 }
 0x273   : > { %2362 = vrcp.f32 %v1074_v25  ;;  %v1089_v59 = vand.u32 2147483648, %v1074_v25  ;;  %v1087_v33 = vand.u32 2147483647, %v1074_v25  ;;  %vm1083_vm2 = vweird.f32 %v1074_v25 }
 0x275   : > { %v1090_v36 = vor.u32 1.1754944e-38, %v1089_v59  ;;  %vm1088_vm4 = vcmp.eq.f32.partialorder %v1087_v33, 8.507059e+37 }
 0x279   : > { %v2363_v32 = vpop.eup %2362 }
 0x27a   : > { %v1079_v2 = vmul.f32 %v2363_v32, %v1074_v25  ;;  %v1077_v58 = vpop.xlane.xlu0 %1076  ;;  %vm1084_vm1 = vweird.f32 %v2363_v32 }
 0x27b   : > { %2364 = vrcp.f32 %v1077_v58  ;;  %vm1085_vm3 = vmor %vm1083_vm2, %vm1084_vm1  ;;  %v1105_v43 = vand.u32 2147483648, %v1077_v58  ;;  %v1103_v46 = vand.u32 2147483647, %v1077_v58  ;;  %vm1099_vm6 = vweird.f32 %v1077_v58 }
 0x27c   : > { %v1080_v57 = vsub.f32 1.0, %v1079_v2 }
 0x27d   : > { %v1106_v52 = vor.u32 1.1754944e-38, %v1105_v43  ;;  %vm1104_vm8 = vcmp.eq.f32.partialorder %v1103_v46, 8.507059e+37 }
 0x27e   : > { %v1081_v31 = vmul.f32 %v2363_v32, %v1080_v57 }
 0x280   : > { %v1082_v35 = vadd.f32 %v2363_v32, %v1081_v31 }
 0x281   : > { %v2365_v39 = vpop.eup %2364 }
 0x282   : > { %v1086_v37 = vsel %vm1085_vm3, %v2363_v32, %v1082_v35  ;;  %v1095_v7 = vmul.f32 %v2365_v39, %v1077_v58  ;;  %vm1100_vm5 = vweird.f32 %v2365_v39 }
 0x283   : > { %v1091_v40 = vsel %vm1088_vm4, %v1090_v36, %v1086_v37  ;;  %vm1101_vm7 = vmor %vm1099_vm6, %vm1100_vm5 }
 0x284   : > { %v1092_v20 = vmul.f32 %v3109_v28, %v1091_v40  ;;  %v1093_v41 = vmul.f32 %v3111_v34, %v1091_v40  ;;  %v1096_v3 = vsub.f32 1.0, %v1095_v7 }
 0x286   : > { %v2158_v42 = vadd.f32 -0.0025, %v1092_v20  ;;  %v2159_v15 = vadd.f32 -0.0025, %v1093_v41  ;;  %v1097_v45 = vmul.f32 %v2365_v39, %v1096_v3 }
 0x288   : > { %v1122_v47 = vand.u32 2147483647, %v2158_v42  ;;  %v1123_v49 = vand.u32 2147483647, %v2159_v15  ;;  %v1098_v50 = vadd.f32 %v2365_v39, %v1097_v45  ;;  %v1114_v54 = vmax.f32 %v2158_v42, 0.0 }
 0x289   : > { %v1115_v56 = vmax.f32 %v2159_v15, 0.0 }
 0x28a   : > { %v1126_v51 = vadd.f32 1e-12, %v1122_v47  ;;  %v1127_v53 = vadd.f32 1e-12, %v1123_v49  ;;  %v1102_v28 = vsel %vm1101_vm7, %v2365_v39, %v1098_v50  ;;  %v1118_v6 = vmul.f32 %v1114_v54, %v1092_v20 }
 0x28b   : > { %v1107_v34 = vsel %vm1104_vm8, %v1106_v52, %v1102_v28  ;;  %v1119_v8 = vmul.f32 %v1115_v56, %v1093_v41 }
 0x28c   : > { %2366 = vrcp.f32 %v1126_v51  ;;  %v1108_v60 = vmul.f32 %v3115_v62, %v1107_v34  ;;  %v1109_v55 = vmul.f32 %v3117_v38, %v1107_v34 }
 0x28d   : > { %2368 = vrcp.f32 %v1127_v53 }
 0x28e   : > { %v2160_v0 = vadd.f32 -0.0025, %v1108_v60  ;;  %v2161_v1 = vadd.f32 -0.0025, %v1109_v55  ;;  %v1296_v5 = vpop.xlane.xlu1 %1295 }
 0x28f   : > { %2370 = vrcp.f32 %v1296_v5  ;;  %v1311_v58 = vand.u32 2147483648, %v1296_v5  ;;  %v1309_v35 = vand.u32 2147483647, %v1296_v5  ;;  %vm1305_vm10 = vweird.f32 %v1296_v5 }
 0x290   : > { %v1124_v10 = vand.u32 2147483647, %v2160_v0  ;;  %v1125_v11 = vand.u32 2147483647, %v2161_v1  ;;  %v1116_v38 = vmax.f32 %v2160_v0, 0.0  ;;  %v1117_v24 = vmax.f32 %v2161_v1, 0.0 }
 0x291   : > { %v1312_v40 = vor.u32 1.1754944e-38, %v1311_v58  ;;  %vm1310_vm12 = vcmp.eq.f32.partialorder %v1309_v35, 8.507059e+37 }
 0x292   : > { %v2367_v4 = vpop.eup %2366  ;;  %v1128_v17 = vadd.f32 1e-12, %v1124_v10  ;;  %v1129_v19 = vadd.f32 1e-12, %v1125_v11  ;;  %v1120_v2 = vmul.f32 %v1116_v38, %v1108_v60  ;;  %v1121_v59 = vmul.f32 %v1117_v24, %v1109_v55 }
 0x293   : > { %v2369_v13 = vpop.eup %2368  ;;  %v3168_v14 = vmul.f32 %v2367_v4, %v1118_v6 }
 0x294   : > { %v3170_v16 = vmul.f32 %v2369_v13, %v1119_v8  ;;  %2372 = vrcp.f32 %v1128_v17 }
 0x295   : > { %2374 = vrcp.f32 %v1129_v19  ;;  %v2371_v22 = vpop.eup %2370 }
 0x296   : > { %v1138_v62 = vadd.f32 %v3170_v16, %v3168_v14  ;;  %v1301_v27 = vmul.f32 %v2371_v22, %v1296_v5  ;;  %vm1306_vm9 = vweird.f32 %v2371_v22 }
 0x297   : > { %vm1307_vm11 = vmor %vm1305_vm10, %vm1306_vm9 }
 0x298   : > { %1139 = vadd.xlane.f32.xlu1 %v1138_v62  ;;  %v1299_v25 = vpop.xlane.xlu2 %1298  ;;  %v1302_v32 = vsub.f32 1.0, %v1301_v27 }
 0x299   : > { %2376 = vrcp.f32 %v1299_v25  ;;  %v1327_v46 = vand.u32 2147483648, %v1299_v25  ;;  %v1325_v51 = vand.u32 2147483647, %v1299_v25  ;;  %vm1321_vm14 = vweird.f32 %v1299_v25 }
 0x29a   : > { %v2373_v57 = vpop.eup %2372  ;;  %v1303_v33 = vmul.f32 %v2371_v22, %v1302_v32 }
 0x29b   : > { %v2375_v31 = vpop.eup %2374  ;;  %v3174_v36 = vmul.f32 %v2373_v57, %v1120_v2  ;;  %v1328_v34 = vor.u32 1.1754944e-38, %v1327_v46  ;;  %vm1326_vm0 = vcmp.eq.f32.partialorder %v1325_v51, 8.507059e+37 }
 0x29c   : > { %v3176_v37 = vmul.f32 %v2375_v31, %v1121_v59  ;;  %v1304_v39 = vadd.f32 %v2371_v22, %v1303_v33 }
 0x29e   : > { %v1141_v7 = vadd.f32 %v3176_v37, %v3174_v36  ;;  %v1308_v41 = vsel %vm1307_vm11, %v2371_v22, %v1304_v39 }
 0x29f   : > { %v2377_v20 = vpop.eup %2376  ;;  %v1313_v42 = vsel %vm1310_vm12, %v1312_v40, %v1308_v41 }
 0x2a0   : > { %v1317_v3 = vmul.f32 %v2377_v20, %v1299_v25  ;;  %1142 = vadd.xlane.f32.xlu2 %v1141_v7  ;;  %v1314_v15 = vmul.f32 %v3121_v44, %v1313_v42  ;;  %v1315_v43 = vmul.f32 %v3123_v26, %v1313_v42  ;;  %vm1322_vm13 = vweird.f32 %v2377_v20 }
 0x2a1   : > { %vm1323_vm15 = vmor %vm1321_vm14, %vm1322_vm13 }
 0x2a2   : > { %v1318_v45 = vsub.f32 1.0, %v1317_v3  ;;  %v2162_v47 = vadd.f32 -0.0025, %v1314_v15  ;;  %v2163_v49 = vadd.f32 -0.0025, %v1315_v43 }
 0x2a4   : > { %v1319_v50 = vmul.f32 %v2377_v20, %v1318_v45  ;;  %v1344_v52 = vand.u32 2147483647, %v2162_v47  ;;  %v1345_v53 = vand.u32 2147483647, %v2163_v49  ;;  %v1336_v0 = vmax.f32 %v2162_v47, 0.0 }
 0x2a5   : > { %v1337_v1 = vmax.f32 %v2163_v49, 0.0 }
 0x2a6   : > { %v1320_v28 = vadd.f32 %v2377_v20, %v1319_v50  ;;  %v1348_v54 = vadd.f32 1e-12, %v1344_v52  ;;  %v1349_v56 = vadd.f32 1e-12, %v1345_v53  ;;  %v1340_v13 = vmul.f32 %v1336_v0, %v1314_v15 }
 0x2a7   : > { %v1341_v17 = vmul.f32 %v1337_v1, %v1315_v43 }
 0x2a8   : > { %v1324_v60 = vsel %vm1323_vm15, %v2377_v20, %v1320_v28  ;;  %2378 = vrcp.f32 %v1348_v54 }
 0x2a9   : > { %v1329_v44 = vsel %vm1326_vm0, %v1328_v34, %v1324_v60  ;;  %2380 = vrcp.f32 %v1349_v56 }
 0x2aa   : > { %v1330_v26 = vmul.f32 %v3127_v21, %v1329_v44  ;;  %v1331_v55 = vmul.f32 %v3129_v48, %v1329_v44 }
 0x2ac   : > { %v2164_v4 = vadd.f32 -0.0025, %v1330_v26  ;;  %v2165_v5 = vadd.f32 -0.0025, %v1331_v55 }
 0x2ae   : > { %v1346_v6 = vand.u32 2147483647, %v2164_v4  ;;  %v1347_v8 = vand.u32 2147483647, %v2165_v5  ;;  %v2379_v10 = vpop.eup %2378  ;;  %v1520_v11 = vpop.xlane.xlu0 %1519  ;;  %v1338_v24 = vmax.f32 %v2164_v4, 0.0  ;;  %v1339_v25 = vmax.f32 %v2165_v5, 0.0 }
 0x2af   : > { %v2381_v19 = vpop.eup %2380  ;;  %2382 = vrcp.f32 %v1520_v11  ;;  %v3184_v62 = vmul.f32 %v2379_v10, %v1340_v13  ;;  %v1535_v31 = vand.u32 2147483648, %v1520_v11  ;;  %v1533_v40 = vand.u32 2147483647, %v1520_v11 }
 0x2b0   : > { %v3186_v38 = vmul.f32 %v2381_v19, %v1341_v17  ;;  %v1350_v22 = vadd.f32 1e-12, %v1346_v6  ;;  %v1351_v21 = vadd.f32 1e-12, %v1347_v8  ;;  %v1342_v58 = vmul.f32 %v1338_v24, %v1330_v26 }
 0x2b1   : > { %v1343_v33 = vmul.f32 %v1339_v25, %v1331_v55  ;;  %vm1529_vm2 = vweird.f32 %v1520_v11  ;;  %v1536_v3 = vor.u32 1.1754944e-38, %v1535_v31  ;;  %vm1534_vm4 = vcmp.eq.f32.partialorder %v1533_v40, 8.507059e+37  ;;  %v3215_v25 = vld [vmem:[#allocation10 + $0xf8] sm:$0xff] }
 0x2b2   : > { %v1360_v48 = vadd.f32 %v3186_v38, %v3184_v62  ;;  %2384 = vrcp.f32 %v1350_v22  ;;  %1201 = vmatpush.msra.mxu2 %v3215_v25 }
 0x2b3   : > { %2386 = vrcp.f32 %v1351_v21 }
 0x2b4   : > { %1361 = vadd.xlane.f32.xlu0 %v1360_v48 }
 0x2b5   : > { %v2383_v27 = vpop.eup %2382 }
 0x2b6   : > { %v1525_v32 = vmul.f32 %v2383_v27, %v1520_v11  ;;  %vm1530_vm1 = vweird.f32 %v2383_v27 }
 0x2b7   : > { %v1523_v2 = vpop.xlane.xlu1 %1522  ;;  %vm1531_vm3 = vmor %vm1529_vm2, %vm1530_vm1 }
 0x2b8   : > { %v1526_v57 = vsub.f32 1.0, %v1525_v32  ;;  %2388 = vrcp.f32 %v1523_v2  ;;  %v2385_v59 = vpop.eup %2384  ;;  %v1549_v34 = vand.u32 2147483647, %v1523_v2  ;;  %v1551_v54 = vand.u32 2147483648, %v1523_v2 }
 0x2b9   : > { %v2387_v35 = vpop.eup %2386  ;;  %v3190_v7 = vmul.f32 %v2385_v59, %v1342_v58  ;;  %vm1545_vm6 = vweird.f32 %v1523_v2 }
 0x2ba   : > { %v1527_v39 = vmul.f32 %v2383_v27, %v1526_v57  ;;  %v3192_v20 = vmul.f32 %v2387_v35, %v1343_v33  ;;  %vm1550_vm8 = vcmp.eq.f32.partialorder %v1549_v34, 8.507059e+37  ;;  %v1552_v1 = vor.u32 1.1754944e-38, %v1551_v54  ;;  %v3235_v33 = vld [vmem:[#allocation10 + $0x68] sm:$0xff]  ;;  %v3299_v57 = vld [vmem:[#allocation10 + $0x40] sm:$0xff] }
 0x2bb   : > { %v3237_v35 = vld [vmem:[#allocation10 + $0xe8] sm:$0xff] }
 0x2bc   : > { %v1528_v41 = vadd.f32 %v2383_v27, %v1527_v39  ;;  %v1363_v42 = vadd.f32 %v3192_v20, %v3190_v7 }
 0x2be   : > { %v2389_v15 = vpop.eup %2388  ;;  %v1532_v43 = vsel %vm1531_vm3, %v2383_v27, %v1528_v41  ;;  %1364 = vadd.xlane.f32.xlu1 %v1363_v42  ;;  %v3213_v27 = vld [vmem:[#allocation10 + $0x78] sm:$0xff] }
 0x2bf   : > { %v1541_v45 = vmul.f32 %v2389_v15, %v1523_v2  ;;  %v1744_v46 = vpop.xlane.xlu2 %1743  ;;  %v1537_v47 = vsel %vm1534_vm4, %v1536_v3, %v1532_v43  ;;  %vm1546_vm5 = vweird.f32 %v2389_v15  ;;  %1178 = vmatpush.msra.mxu1 %v3213_v27 }
 0x2c0   : > { %2390 = vrcp.f32 %v1744_v46  ;;  %v1538_v50 = vmul.f32 %v3136_v61, %v1537_v47  ;;  %v1539_v51 = vmul.f32 %v3138_v63, %v1537_v47  ;;  %vm1547_vm7 = vmor %vm1545_vm6, %vm1546_vm5  ;;  %v1757_v6 = vand.u32 2147483647, %v1744_v46  ;;  %v3249_v47 = vld [vmem:[#allocation10 + $0x60] sm:$0xff] }
 0x2c1   : > { %v1542_v49 = vsub.f32 1.0, %v1541_v45  ;;  %v1759_v8 = vand.u32 2147483648, %v1744_v46  ;;  %vm1753_vm10 = vweird.f32 %v1744_v46 }
 0x2c2   : > { %v2172_v53 = vadd.f32 -0.0025, %v1538_v50  ;;  %v2173_v28 = vadd.f32 -0.0025, %v1539_v51  ;;  %vm3229_vm12 = vcmp.eq.f32.partialorder %v1757_v6, 8.507059e+37 }
 0x2c3   : > { %v1543_v52 = vmul.f32 %v2389_v15, %v1542_v49  ;;  %v1760_v58 = vor.u32 1.1754944e-38, %v1759_v8  ;;  %v3251_v49 = vld [vmem:[#allocation10 + $0xe0] sm:$0xff] }
 0x2c4   : > { %v1568_v60 = vand.u32 2147483647, %v2172_v53  ;;  %v1569_v26 = vand.u32 2147483647, %v2173_v28  ;;  %v1560_v10 = vmax.f32 %v2172_v53, 0.0  ;;  %v1561_v22 = vmax.f32 %v2173_v28, 0.0 }
 0x2c5   : > { %v1544_v56 = vadd.f32 %v2389_v15, %v1543_v52 }
 0x2c6   : > { %v2391_v44 = vpop.eup %2390  ;;  %v1572_v63 = vadd.f32 1e-12, %v1568_v60  ;;  %v1573_v4 = vadd.f32 1e-12, %v1569_v26  ;;  %v1564_v31 = vmul.f32 %v1560_v10, %v1538_v50  ;;  %v1565_v39 = vmul.f32 %v1561_v22, %v1539_v51  ;;  %v3267_v60 = vld [vmem:[#allocation10 + $0x58] sm:$0xff]  ;;  %v3290_v10 = vld [vmem:[#allocation10 + $0x48] sm:$0xff] }
 0x2c7   : > { %v1749_v55 = vmul.f32 %v2391_v44, %v1744_v46  ;;  %v3198_v0 = vpop.xlane.xlu0 %1746  ;;  %v1548_v5 = vsel %vm1547_vm7, %v2389_v15, %v1544_v56  ;;  %vm1754_vm9 = vweird.f32 %v2391_v44 }
 0x2c8   : > { %2392 = vrcp.f32 %v3198_v0  ;;  %v1553_v11 = vsel %vm1550_vm8, %v1552_v1, %v1548_v5  ;;  %vm3225_vm11 = vmor %vm1753_vm10, %vm1754_vm9  ;;  %v1773_v43 = vand.u32 2147483647, %v3198_v0  ;;  %v1775_v45 = vand.u32 2147483648, %v3198_v0 }
 0x2c9   : > { %v1750_v61 = vsub.f32 1.0, %v1749_v55  ;;  %2394 = vrcp.f32 %v1572_v63  ;;  %v3202_v17 = vmul.f32 %v3144_v9, %v1553_v11  ;;  %v3205_v19 = vmul.f32 %v3146_v12, %v1553_v11  ;;  %v3221_v9 = vld [vmem:[#allocation10 + $0x70] sm:$0xff]  ;;  %v3292_v11 = vld [vmem:[#allocation10 + $0xc8] sm:$0xff] }
 0x2ca   : > { %2396 = vrcp.f32 %v1573_v4  ;;  %v3223_v12 = vld [vmem:[#allocation10 + $0xf0] sm:$0xff]  ;;  %1179 = vmatpush.msra.mxu1 %v3221_v9  ;;  %vm1769_vm14 = vweird.f32 %v3198_v0  ;;  %v1776_v63 = vor.u32 1.1754944e-38, %v1775_v45  ;;  %vm1774_vm0 = vcmp.eq.f32.partialorder %v1773_v43, 8.507059e+37 }
 0x2cb   : > { %v1751_v13 = vmul.f32 %v2391_v44, %v1750_v61  ;;  %v3208_v48 = vadd.f32 -0.0025, %v3202_v17  ;;  %v3211_v24 = vadd.f32 -0.0025, %v3205_v19  ;;  %1202 = vmatpush.msra.mxu2 %v3223_v12  ;;  %v3280_v61 = vld [vmem:[#allocation10 + $0x50] sm:$0xff] }
 0x2cc   : > { %1180 = vmatpush.msra.mxu1 %v3235_v33  ;;  %v3316_v43 = vld [vmem:[#allocation10 + $0x30] sm:$0xff] }
 0x2cd   : > { %v1752_v21 = vadd.f32 %v2391_v44, %v1751_v13  ;;  %v1570_v40 = vand.u32 2147483647, %v3208_v48  ;;  %v1571_v41 = vand.u32 2147483647, %v3211_v24  ;;  %1203 = vmatpush.msra.mxu2 %v3237_v35  ;;  %v1563_v4 = vmax.f32 %v3211_v24, 0.0 }
 0x2ce   : > { %v3217_v32 = vpop.eup %2392  ;;  %1181 = vmatpush.msra.mxu1 %v3249_v47 }
 0x2cf   : > { %v1765_v59 = vmul.f32 %v3217_v32, %v3198_v0  ;;  %v1756_v3 = vsel %vm3225_vm11, %v2391_v44, %v1752_v21  ;;  %v2395_v42 = vpop.eup %2394  ;;  %v1574_v52 = vadd.f32 1e-12, %v1570_v40  ;;  %v1575_v53 = vadd.f32 1e-12, %v1571_v41  ;;  %v3269_v44 = vld [vmem:[#allocation10 + $0xd8] sm:$0xff]  ;;  %1204 = vmatpush.msra.mxu2 %v3251_v49  ;;  %v3282_v0 = vld [vmem:[#allocation10 + $0xd0] sm:$0xff] }
 0x2d0   : > { %v1761_v46 = vsel %vm3229_vm12, %v1760_v58, %v1756_v3  ;;  %v2397_v50 = vpop.eup %2396  ;;  %v3253_v51 = vmul.f32 %v2395_v42, %v1564_v31  ;;  %vm1770_vm13 = vweird.f32 %v3217_v32  ;;  %1182 = vmatpush.msra.mxu1 %v3267_v60  ;;  %v3310_v41 = vld [vmem:[#allocation10 + $0xb8] sm:$0xff] }
 0x2d1   : > { %v1766_v15 = vsub.f32 1.0, %v1765_v59  ;;  %v3256_v28 = vmul.f32 %v3152_v18, %v1761_v46  ;;  %v3262_v54 = vmul.f32 %v2397_v50, %v1565_v39  ;;  %v3265_v56 = vmul.f32 %v3154_v23, %v1761_v46  ;;  %vm1771_vm15 = vmor %vm1769_vm14, %vm1770_vm13  ;;  %1205 = vmatpush.msra.mxu2 %v3269_v44  ;;  %v3322_v46 = vld [vmem:[#allocation10 + $0xb0] sm:$0xff] }
 0x2d2   : > { %v1562_v18 = vmax.f32 %v3208_v48, 0.0  ;;  %2398 = vrcp.f32 %v1574_v52  ;;  %1183 = vmatpush.msra.mxu1 %v3280_v61  ;;  %v1567_v59 = vmul.f32 %v1563_v4, %v3205_v19 }
 0x2d3   : > { %v1767_v34 = vmul.f32 %v3217_v32, %v1766_v15  ;;  %v2182_v26 = vadd.f32 -0.0025, %v3256_v28  ;;  %v1584_v23 = vadd.f32 %v3262_v54, %v3253_v51  ;;  %2400 = vrcp.f32 %v1575_v53  ;;  %1206 = vmatpush.msra.mxu2 %v3282_v0 }
 0x2d4   : > { %v2183_v1 = vadd.f32 -0.0025, %v3265_v56  ;;  %v1566_v21 = vmul.f32 %v1562_v18, %v3202_v17  ;;  %1184 = vmatpush.msra.mxu1 %v3290_v10 }
 0x2d5   : > { %v1768_v55 = vadd.f32 %v3217_v32, %v1767_v34  ;;  %v1792_v5 = vand.u32 2147483647, %v2182_v26  ;;  %1585 = vadd.xlane.f32.xlu2 %v1584_v23  ;;  %v1784_v31 = vmax.f32 %v2182_v26, 0.0  ;;  %1207 = vmatpush.msra.mxu2 %v3292_v11  ;;  %v3325_v34 = vld [vmem:[#allocation10 + $0x28] sm:$0xff] }
 0x2d6   : > { %v1793_v6 = vand.u32 2147483647, %v2183_v1  ;;  %v1785_v42 = vmax.f32 %v2183_v1, 0.0  ;;  %1185 = vmatpush.msra.mxu1 %v3299_v57 }
 0x2d7   : > { %v1772_v8 = vsel %vm1771_vm15, %v3217_v32, %v1768_v55  ;;  %v1796_v13 = vadd.f32 1e-12, %v1792_v5  ;;  %v3301_v32 = vld [vmem:[#allocation10 + $0xc0] sm:$0xff]  ;;  %v1788_v50 = vmul.f32 %v1784_v31, %v3256_v28  ;;  %v3329_v55 = vld [vmem:[#allocation10 + $0xa8] sm:$0xff] }
 0x2d8   : > { %v1777_v22 = vsel %vm1774_vm0, %v1776_v63, %v1772_v8  ;;  %v1797_v48 = vadd.f32 1e-12, %v1793_v6  ;;  %v2399_v58 = vpop.eup %2398  ;;  %1208 = vmatpush.msra.mxu2 %v3301_v32  ;;  %v1789_v26 = vmul.f32 %v1785_v42, %v3265_v56  ;;  %v3334_v63 = vld [vmem:[#allocation10 + $0x20] sm:$0xff]  ;;  %v3342_v6 = vld [vmem:[#allocation10 + $0x18] sm:$0xff]  ;;  %v3356_v31 = vld [vmem:[#allocation10 + $0x8] sm:$0xff] }
 0x2d9   : > { %v1778_v24 = vmul.f32 %v3158_v29, %v1777_v22  ;;  %v1779_v2 = vmul.f32 %v3160_v30, %v1777_v22  ;;  %2402 = vrcp.f32 %v1796_v13  ;;  %v2401_v39 = vpop.eup %2400  ;;  %v3306_v17 = vmul.f32 %v2399_v58, %v1566_v21  ;;  %v3308_v30 = vld [vmem:[#allocation10 + $0x38] sm:$0xff]  ;;  %v3339_v5 = vld [vmem:[#allocation10 + $0xa0] sm:$0xff]  ;;  %v3350_v22 = vld [vmem:[#allocation10 + $0x10] sm:$0xff] }
 0x2da   : > { %2404 = vrcp.f32 %v1797_v48  ;;  %v3312_v3 = vmul.f32 %v2401_v39, %v1567_v59  ;;  %1186 = vmatpush.msra.mxu1 %v3308_v30  ;;  %1209 = vmatpush.msra.mxu2 %v3310_v41  ;;  %v3347_v13 = vld [vmem:[#allocation10 + $0x98] sm:$0xff]  ;;  %v3353_v48 = vld [vmem:[#allocation10 + $0x90] sm:$0xff] }
 0x2db   : > { %v2184_v29 = vadd.f32 -0.0025, %v1778_v24  ;;  %v2185_v40 = vadd.f32 -0.0025, %v1779_v2 }
 0x2dc   : > { %v1587_v45 = vadd.f32 %v3312_v3, %v3306_v17  ;;  %1187 = vmatpush.msra.mxu1 %v3316_v43  ;;  %1210 = vmatpush.msra.mxu2 %v3322_v46 }
 0x2dd   : > { %v1794_v19 = vand.u32 2147483647, %v2184_v29  ;;  %v1795_v15 = vand.u32 2147483647, %v2185_v40  ;;  %v1786_v4 = vmax.f32 %v2184_v29, 0.0  ;;  %v1787_v56 = vmax.f32 %v2185_v40, 0.0 }
 0x2de   : > { %1588 = vadd.xlane.f32.xlu0 %v1587_v45  ;;  %1188 = vmatpush.msra.mxu1 %v3325_v34  ;;  %v3361_v40 = vld [vmem:[#allocation10 + $0x88] sm:$0xff] }
 0x2df   : > { %v1798_v52 = vadd.f32 1e-12, %v1794_v19  ;;  %v1799_v53 = vadd.f32 1e-12, %v1795_v15  ;;  %v2403_v18 = vpop.eup %2402  ;;  %1211 = vmatpush.msra.mxu2 %v3329_v55  ;;  %v1790_v21 = vmul.f32 %v1786_v4, %v1778_v24  ;;  %v1791_v59 = vmul.f32 %v1787_v56, %v1779_v2  ;;  %v3366_v24 = vld [vmem:[#allocation10] sm:$0xff] }
 0x2e0   : > { %v2405_v23 = vpop.eup %2404  ;;  %v3331_v1 = vmul.f32 %v2403_v18, %v1788_v50  ;;  %1189 = vmatpush.msra.mxu1 %v3334_v63  ;;  %v3369_v2 = vld [vmem:[#allocation10 + $0x80] sm:$0xff] }
 0x2e1   : > { %2406 = vrcp.f32 %v1798_v52  ;;  %v3336_v28 = vmul.f32 %v2405_v23, %v1789_v26  ;;  %1212 = vmatpush.msra.mxu2 %v3339_v5 }
 0x2e2   : > { %2408 = vrcp.f32 %v1799_v53  ;;  %1190 = vmatpush.msra.mxu1 %v3342_v6 }
 0x2e3   : > { %v1808_v8 = vadd.f32 %v3336_v28, %v3331_v1  ;;  %1213 = vmatpush.msra.mxu2 %v3347_v13 }
 0x2e4   : > { %1191 = vmatpush.msra.mxu1 %v3350_v22 }
 0x2e5   : > { %1809 = vadd.xlane.f32.xlu1 %v1808_v8  ;;  %1214 = vmatpush.msra.mxu2 %v3353_v48 }
 0x2e6   : > { %1192 = vmatpush.msra.mxu1 %v3356_v31 }
 0x2e7   : > { %v2407_v58 = vpop.eup %2406  ;;  %1215 = vmatpush.msra.mxu2 %v3361_v40 }
 0x2e8   : > { %v2409_v39 = vpop.eup %2408  ;;  %v3358_v29 = vmul.f32 %v2407_v58, %v1790_v21  ;;  %1193 = vmatpush.msra.mxu1 %v3366_v24 }
 0x2e9   : > { %v3363_v42 = vmul.f32 %v2409_v39, %v1791_v59  ;;  %1216 = vmatpush.msra.mxu2 %v3369_v2 }
 0x2ea   : > { %1400 = vmatpush.msrb.mxu1 %v3213_v27 }
 0x2eb   : > { %v1811_v19 = vadd.f32 %v3363_v42, %v3358_v29  ;;  %1423 = vmatpush.msrb.mxu2 %v3215_v25 }
 0x2ec   : > { %1401 = vmatpush.msrb.mxu1 %v3221_v9 }
 0x2ed   : > { %1812 = vadd.xlane.f32.xlu2 %v1811_v19  ;;  %1424 = vmatpush.msrb.mxu2 %v3223_v12 }
 0x2ee   : > { %1402 = vmatpush.msrb.mxu1 %v3235_v33 }
 0x2ef   : > { %1425 = vmatpush.msrb.mxu2 %v3237_v35 }
 0x2f0   : > { %1403 = vmatpush.msrb.mxu1 %v3249_v47 }
 0x2f1   : > { %1426 = vmatpush.msrb.mxu2 %v3251_v49 }
 0x2f2   : > { %1404 = vmatpush.msrb.mxu1 %v3267_v60 }
 0x2f3   : > { %1427 = vmatpush.msrb.mxu2 %v3269_v44 }
 0x2f4   : > { %1405 = vmatpush.msrb.mxu1 %v3280_v61 }
 0x2f5   : > { %1428 = vmatpush.msrb.mxu2 %v3282_v0 }
 0x2f6   : > { %1406 = vmatpush.msrb.mxu1 %v3290_v10 }
 0x2f7   : > { %1429 = vmatpush.msrb.mxu2 %v3292_v11 }
 0x2f8   : > { %1407 = vmatpush.msrb.mxu1 %v3299_v57 }
 0x2f9   : > { %1430 = vmatpush.msrb.mxu2 %v3301_v32 }
 0x2fa   : > { %1408 = vmatpush.msrb.mxu1 %v3308_v30 }
 0x2fb   : > { %1431 = vmatpush.msrb.mxu2 %v3310_v41 }
 0x2fc   : > { %1409 = vmatpush.msrb.mxu1 %v3316_v43 }
 0x2fd   : > { %1432 = vmatpush.msrb.mxu2 %v3322_v46 }
 0x2fe   : > { %1410 = vmatpush.msrb.mxu1 %v3325_v34 }
 0x2ff   : > { %1433 = vmatpush.msrb.mxu2 %v3329_v55 }
 0x300   : > { %1411 = vmatpush.msrb.mxu1 %v3334_v63 }
 0x301   : > { %1434 = vmatpush.msrb.mxu2 %v3339_v5 }
 0x302   : > { %1412 = vmatpush.msrb.mxu1 %v3342_v6 }
 0x303   : > { %1435 = vmatpush.msrb.mxu2 %v3347_v13 }
 0x304   : > { %1413 = vmatpush.msrb.mxu1 %v3350_v22 }
 0x305   : > { %1436 = vmatpush.msrb.mxu2 %v3353_v48 }
 0x306   : > { %1414 = vmatpush.msrb.mxu1 %v3356_v31 }
 0x307   : > { %1437 = vmatpush.msrb.mxu2 %v3361_v40 }
 0x308   : > { %1415 = vmatpush.msrb.mxu1 %v3366_v24 }
 0x309   : > { %1438 = vmatpush.msrb.mxu2 %v3369_v2 }
 0x30b   : > { %v1140_v15 = vpop.xlane.xlu1 %1139 }
 0x30c   : > { %v1144_v45 = vmax.f32 %v1140_v15, 1e-12 }
 0x30e   : > { %2410 = vrcp.f32 %v1144_v45  ;;  %v1157_v23 = vand.u32 2147483648, %v1144_v45  ;;  %v1155_v56 = vand.u32 2147483647, %v1144_v45  ;;  %vm1151_vm2 = vweird.f32 %v1144_v45 }
 0x310   : > { %v1158_v21 = vor.u32 1.1754944e-38, %v1157_v23  ;;  %vm1156_vm4 = vcmp.eq.f32.partialorder %v1155_v56, 8.507059e+37 }
 0x313   : > { %v1143_v53 = vpop.xlane.xlu2 %1142 }
 0x314   : > { %v2411_v50 = vpop.eup %2410  ;;  %v1145_v26 = vmax.f32 %v1143_v53, 1e-12 }
 0x315   : > { %v1147_v52 = vmul.f32 %v2411_v50, %v1144_v45  ;;  %vm1152_vm1 = vweird.f32 %v2411_v50 }
 0x316   : > { %2412 = vrcp.f32 %v1145_v26  ;;  %vm1153_vm3 = vmor %vm1151_vm2, %vm1152_vm1  ;;  %vm1167_vm6 = vweird.f32 %v1145_v26 }
 0x317   : > { %v1148_v18 = vsub.f32 1.0, %v1147_v52 }
 0x319   : > { %v1149_v4 = vmul.f32 %v2411_v50, %v1148_v18 }
 0x31b   : > { %v1150_v8 = vadd.f32 %v2411_v50, %v1149_v4 }
 0x31c   : > { %v2413_v39 = vpop.eup %2412 }
 0x31d   : > { %v1154_v58 = vsel %vm1153_vm3, %v2411_v50, %v1150_v8  ;;  %v1163_v52 = vmul.f32 %v2413_v39, %v1145_v26  ;;  %v1173_v50 = vand.u32 2147483648, %v1145_v26  ;;  %vm1168_vm5 = vweird.f32 %v2413_v39 }
 0x31e   : > { %v1159_v59 = vsel %vm1156_vm4, %v1158_v21, %v1154_v58  ;;  %vm1169_vm7 = vmor %vm1167_vm6, %vm1168_vm5 }
 0x31f   : > { %v1160_v19 = vmul.f32 %v1159_v59, %v3168_v14  ;;  %v1161_v15 = vmul.f32 %v1159_v59, %v3170_v16  ;;  %v1164_v45 = vsub.f32 1.0, %v1163_v52  ;;  %v1171_v14 = vand.u32 2147483647, %v1145_v26 }
 0x320   : > { %v1174_v18 = vor.u32 1.1754944e-38, %v1173_v50 }
 0x321   : > { %1194 = vmatmul.f32.vlgmr.msra.gmra.mxu1 %v1160_v19  ;;  %1226 = vst [vmem:[%s3411_s8] sm:$0xff] %v1160_v19  ;;  %1217 = vmatmul.f32.vlgmr.msra.gmra.mxu2 %v1161_v15  ;;  %v1165_v53 = vmul.f32 %v2413_v39, %v1164_v45  ;;  %vm1172_vm8 = vcmp.eq.f32.partialorder %v1171_v14, 8.507059e+37 }
 0x322   : > { %1227 = vst [vmem:[%s3411_s8 + $0x8] sm:$0xff] %v1161_v15  ;;  %1624 = vmatpush.msra.mxu1 %v3213_v27  ;;  %1647 = vmatpush.msra.mxu2 %v3215_v25 }
 0x323   : > { %v1166_v16 = vadd.f32 %v2413_v39, %v1165_v53 }
 0x324   : > { %1625 = vmatpush.msra.mxu1 %v3221_v9  ;;  %1648 = vmatpush.msra.mxu2 %v3223_v12 }
 0x325   : > { %v1170_v23 = vsel %vm1169_vm7, %v2413_v39, %v1166_v16 }
 0x326   : > { %1626 = vmatpush.msra.mxu1 %v3235_v33  ;;  %1649 = vmatpush.msra.mxu2 %v3237_v35  ;;  %v1175_v4 = vsel %vm1172_vm8, %v1174_v18, %v1170_v23 }
 0x327   : > { %v1176_v56 = vmul.f32 %v1175_v4, %v3174_v36  ;;  %v1177_v8 = vmul.f32 %v1175_v4, %v3176_v37  ;;  %v1362_v26 = vpop.xlane.xlu0 %1361 }
 0x328   : > { %1627 = vmatpush.msra.mxu1 %v3249_v47  ;;  %1650 = vmatpush.msra.mxu2 %v3251_v49  ;;  %v1366_v21 = vmax.f32 %v1362_v26, 1e-12 }
 0x329   : > { %1197 = vmatmul.f32.gmra.mxu1 %v1176_v56  ;;  %1228 = vst [vmem:[%s3411_s8 + $0x10] sm:$0xff] %v1176_v56  ;;  %1220 = vmatmul.f32.gmra.mxu2 %v1177_v8 }
 0x32a   : > { %1628 = vmatpush.msra.mxu1 %v3267_v60  ;;  %1651 = vmatpush.msra.mxu2 %v3269_v44  ;;  %1229 = vst [vmem:[%s3411_s8 + $0x18] sm:$0xff] %v1177_v8  ;;  %2414 = vrcp.f32 %v1366_v21  ;;  %v1379_v19 = vand.u32 2147483648, %v1366_v21  ;;  %v1377_v52 = vand.u32 2147483647, %v1366_v21  ;;  %vm1373_vm10 = vweird.f32 %v1366_v21 }
 0x32c   : > { %1629 = vmatpush.msra.mxu1 %v3280_v61  ;;  %1652 = vmatpush.msra.mxu2 %v3282_v0  ;;  %v1380_v50 = vor.u32 1.1754944e-38, %v1379_v19  ;;  %vm1378_vm12 = vcmp.eq.f32.partialorder %v1377_v52, 8.507059e+37 }
 0x32e   : > { %1630 = vmatpush.msra.mxu1 %v3290_v10  ;;  %1653 = vmatpush.msra.mxu2 %v3292_v11 }
 0x330   : > { %1631 = vmatpush.msra.mxu1 %v3299_v57  ;;  %1654 = vmatpush.msra.mxu2 %v3301_v32  ;;  %v2415_v36 = vpop.eup %2414 }
 0x331   : > { %v1369_v37 = vmul.f32 %v2415_v36, %v1366_v21  ;;  %v1365_v58 = vpop.xlane.xlu1 %1364  ;;  %vm1374_vm9 = vweird.f32 %v2415_v36 }
 0x332   : > { %1632 = vmatpush.msra.mxu1 %v3308_v30  ;;  %1655 = vmatpush.msra.mxu2 %v3310_v41  ;;  %v1367_v39 = vmax.f32 %v1365_v58, 1e-12  ;;  %vm1375_vm11 = vmor %vm1373_vm10, %vm1374_vm9 }
 0x333   : > { %v1370_v59 = vsub.f32 1.0, %v1369_v37 }
 0x334   : > { %1633 = vmatpush.msra.mxu1 %v3316_v43  ;;  %1656 = vmatpush.msra.mxu2 %v3322_v46  ;;  %2416 = vrcp.f32 %v1367_v39  ;;  %v1395_v8 = vand.u32 2147483648, %v1367_v39  ;;  %vm1389_vm14 = vweird.f32 %v1367_v39 }
 0x335   : > { %v1371_v15 = vmul.f32 %v2415_v36, %v1370_v59 }
 0x336   : > { %1634 = vmatpush.msra.mxu1 %v3325_v34  ;;  %1657 = vmatpush.msra.mxu2 %v3329_v55  ;;  %v1396_v21 = vor.u32 1.1754944e-38, %v1395_v8 }
 0x337   : > { %v1372_v45 = vadd.f32 %v2415_v36, %v1371_v15 }
 0x338   : > { %1635 = vmatpush.msra.mxu1 %v3334_v63  ;;  %1658 = vmatpush.msra.mxu2 %v3339_v5 }
 0x339   : > { %v1376_v53 = vsel %vm1375_vm11, %v2415_v36, %v1372_v45 }
 0x33a   : > { %1636 = vmatpush.msra.mxu1 %v3342_v6  ;;  %1659 = vmatpush.msra.mxu2 %v3347_v13  ;;  %v1381_v14 = vsel %vm1378_vm12, %v1380_v50, %v1376_v53  ;;  %v2417_v16 = vpop.eup %2416 }
 0x33b   : > { %v1382_v18 = vmul.f32 %v1381_v14, %v3184_v62  ;;  %v1383_v23 = vmul.f32 %v1381_v14, %v3186_v38  ;;  %v1385_v4 = vmul.f32 %v2417_v16, %v1367_v39  ;;  %vm1390_vm13 = vweird.f32 %v2417_v16 }
 0x33c   : > { %1637 = vmatpush.msra.mxu1 %v3350_v22  ;;  %1660 = vmatpush.msra.mxu2 %v3353_v48  ;;  %v1393_v38 = vand.u32 2147483647, %v1367_v39  ;;  %vm1391_vm15 = vmor %vm1389_vm14, %vm1390_vm13 }
 0x33d   : > { %1416 = vmatmul.f32.vlgmr.msrb.gmra.mxu1 %v1382_v18  ;;  %2168 = vst [vmem:[%s3411_s8 + $0x20] sm:$0xff] %v1382_v18  ;;  %1439 = vmatmul.f32.vlgmr.msrb.gmra.mxu2 %v1383_v23  ;;  %v1386_v56 = vsub.f32 1.0, %v1385_v4 }
 0x33e   : > { %1638 = vmatpush.msra.mxu1 %v3356_v31  ;;  %1661 = vmatpush.msra.mxu2 %v3361_v40  ;;  %2169 = vst [vmem:[%s3411_s8 + $0x28] sm:$0xff] %v1383_v23  ;;  %vm1394_vm0 = vcmp.eq.f32.partialorder %v1393_v38, 8.507059e+37 }
 0x33f   : > { %v1387_v62 = vmul.f32 %v2417_v16, %v1386_v56 }
 0x340   : > { %1639 = vmatpush.msra.mxu1 %v3366_v24  ;;  %1662 = vmatpush.msra.mxu2 %v3369_v2 }
 0x341   : > { %v1388_v26 = vadd.f32 %v2417_v16, %v1387_v62 }
 0x342   : > { %1848 = vmatpush.msrb.mxu1 %v3213_v27  ;;  %1871 = vmatpush.msrb.mxu2 %v3215_v25 }
 0x343   : > { %v1392_v27 = vsel %vm1391_vm15, %v2417_v16, %v1388_v26 }
 0x344   : > { %1849 = vmatpush.msrb.mxu1 %v3221_v9  ;;  %1872 = vmatpush.msrb.mxu2 %v3223_v12  ;;  %v1397_v25 = vsel %vm1394_vm0, %v1396_v21, %v1392_v27 }
 0x345   : > { %v1398_v9 = vmul.f32 %v1397_v25, %v3190_v7  ;;  %v1399_v12 = vmul.f32 %v1397_v25, %v3192_v20 }
 0x346   : > { %1850 = vmatpush.msrb.mxu1 %v3235_v33  ;;  %1873 = vmatpush.msrb.mxu2 %v3237_v35 }
 0x347   : > { %1419 = vmatmul.f32.gmra.mxu1 %v1398_v9  ;;  %2170 = vst [vmem:[%s3411_s8 + $0x30] sm:$0xff] %v1398_v9  ;;  %1442 = vmatmul.f32.gmra.mxu2 %v1399_v12 }
 0x348   : > { %1851 = vmatpush.msrb.mxu1 %v3249_v47  ;;  %1874 = vmatpush.msrb.mxu2 %v3251_v49  ;;  %2171 = vst [vmem:[%s3411_s8 + $0x38] sm:$0xff] %v1399_v12  ;;  %v1586_v33 = vpop.xlane.xlu2 %1585 }
 0x349   : > { %v1590_v35 = vmax.f32 %v1586_v33, 1e-12 }
 0x34a   : > { %1852 = vmatpush.msrb.mxu1 %v3267_v60  ;;  %1875 = vmatpush.msrb.mxu2 %v3269_v44 }
 0x34b   : > { %2418 = vrcp.f32 %v1590_v35  ;;  %v1603_v44 = vand.u32 2147483648, %v1590_v35  ;;  %vm1597_vm2 = vweird.f32 %v1590_v35 }
 0x34c   : > { %1853 = vmatpush.msrb.mxu1 %v3280_v61  ;;  %1876 = vmatpush.msrb.mxu2 %v3282_v0  ;;  %v1601_v0 = vand.u32 2147483647, %v1590_v35 }
 0x34e   : > { %1854 = vmatpush.msrb.mxu1 %v3290_v10  ;;  %1877 = vmatpush.msrb.mxu2 %v3292_v11  ;;  %vm1602_vm4 = vcmp.eq.f32.partialorder %v1601_v0, 8.507059e+37 }
 0x350   : > { %1855 = vmatpush.msrb.mxu1 %v3299_v57  ;;  %1878 = vmatpush.msrb.mxu2 %v3301_v32  ;;  %v1604_v32 = vor.u32 1.1754944e-38, %v1603_v44 }
 0x351   : > { %v2419_v7 = vpop.eup %2418  ;;  %v1589_v20 = vpop.xlane.xlu0 %1588 }
 0x352   : > { %1856 = vmatpush.msrb.mxu1 %v3308_v30  ;;  %1879 = vmatpush.msrb.mxu2 %v3310_v41  ;;  %v1593_v47 = vmul.f32 %v2419_v7, %v1590_v35  ;;  %v1591_v49 = vmax.f32 %v1589_v20, 1e-12  ;;  %vm1598_vm1 = vweird.f32 %v2419_v7 }
 0x353   : > { %vm1599_vm3 = vmor %vm1597_vm2, %vm1598_vm1 }
 0x354   : > { %1857 = vmatpush.msrb.mxu1 %v3316_v43  ;;  %1880 = vmatpush.msrb.mxu2 %v3322_v46  ;;  %v1594_v60 = vsub.f32 1.0, %v1593_v47  ;;  %2420 = vrcp.f32 %v1591_v49  ;;  %vm1613_vm6 = vweird.f32 %v1591_v49 }
 0x356   : > { %1858 = vmatpush.msrb.mxu1 %v3325_v34  ;;  %1881 = vmatpush.msrb.mxu2 %v3329_v55  ;;  %v1595_v61 = vmul.f32 %v2419_v7, %v1594_v60 }
 0x358   : > { %1859 = vmatpush.msrb.mxu1 %v3334_v63  ;;  %1882 = vmatpush.msrb.mxu2 %v3339_v5  ;;  %v1810_v10 = vpop.xlane.xlu1 %1809  ;;  %v1596_v57 = vadd.f32 %v2419_v7, %v1595_v61 }
 0x359   : > { %v1814_v11 = vmax.f32 %v1810_v10, 1e-12 }
 0x35a   : > { %1860 = vmatpush.msrb.mxu1 %v3342_v6  ;;  %1883 = vmatpush.msrb.mxu2 %v3347_v13  ;;  %v2421_v30 = vpop.eup %2420  ;;  %v1600_v41 = vsel %vm1599_vm3, %v2419_v7, %v1596_v57  ;;  %v1619_v6 = vand.u32 2147483648, %v1591_v49 }
 0x35b   : > { %2422 = vrcp.f32 %v1814_v11  ;;  %v1609_v43 = vmul.f32 %v2421_v30, %v1591_v49  ;;  %v1605_v46 = vsel %vm1602_vm4, %v1604_v32, %v1600_v41  ;;  %vm1614_vm5 = vweird.f32 %v2421_v30 }
 0x35c   : > { %1861 = vmatpush.msrb.mxu1 %v3350_v22  ;;  %1884 = vmatpush.msrb.mxu2 %v3353_v48  ;;  %v1606_v34 = vmul.f32 %v1605_v46, %v3253_v51  ;;  %v1607_v55 = vmul.f32 %v1605_v46, %v3262_v54  ;;  %v1617_v48 = vand.u32 2147483647, %v1591_v49  ;;  %vm1615_vm7 = vmor %vm1613_vm6, %vm1614_vm5  ;;  %v1620_v51 = vor.u32 1.1754944e-38, %v1619_v6 }
 0x35d   : > { %v1610_v63 = vsub.f32 1.0, %v1609_v43  ;;  %v1827_v36 = vand.u32 2147483648, %v1814_v11  ;;  %v1825_v58 = vand.u32 2147483647, %v1814_v11  ;;  %vm1821_vm10 = vweird.f32 %v1814_v11 }
 0x35e   : > { %1862 = vmatpush.msrb.mxu1 %v3356_v31  ;;  %1885 = vmatpush.msrb.mxu2 %v3361_v40  ;;  %2178 = vst [vmem:[%s3411_s8 + $0x40] sm:$0xff] %v1606_v34  ;;  %vm1618_vm8 = vcmp.eq.f32.partialorder %v1617_v48, 8.507059e+37 }
 0x35f   : > { %1640 = vmatmul.f32.vlgmr.msra.gmra.mxu1 %v1606_v34  ;;  %1663 = vmatmul.f32.vlgmr.msra.gmra.mxu2 %v1607_v55  ;;  %2179 = vst [vmem:[%s3411_s8 + $0x48] sm:$0xff] %v1607_v55  ;;  %v1611_v22 = vmul.f32 %v2421_v30, %v1610_v63  ;;  %v1828_v45 = vor.u32 1.1754944e-38, %v1827_v36  ;;  %vm1826_vm12 = vcmp.eq.f32.partialorder %v1825_v58, 8.507059e+37 }
 0x360   : > { %1863 = vmatpush.msrb.mxu1 %v3366_v24  ;;  %1886 = vmatpush.msrb.mxu2 %v3369_v2  ;;  %v1813_v5 = vpop.xlane.xlu2 %1812 }
 0x361   : > { %v1815_v13 = vmax.f32 %v1813_v5, 1e-12  ;;  %v2423_v31 = vpop.eup %2422  ;;  %v1612_v24 = vadd.f32 %v2421_v30, %v1611_v22 }
 0x362   : > { %v1817_v40 = vmul.f32 %v2423_v31, %v1814_v11  ;;  %vm1822_vm9 = vweird.f32 %v2423_v31 }
 0x363   : > { %2424 = vrcp.f32 %v1815_v13  ;;  %v1616_v2 = vsel %vm1615_vm7, %v2421_v30, %v1612_v24  ;;  %vm1823_vm11 = vmor %vm1821_vm10, %vm1822_vm9  ;;  %v1843_v18 = vand.u32 2147483648, %v1815_v13  ;;  %v1841_v4 = vand.u32 2147483647, %v1815_v13 }
 0x364   : > { %v1818_v54 = vsub.f32 1.0, %v1817_v40  ;;  %v1621_v37 = vsel %vm1618_vm8, %v1620_v51, %v1616_v2  ;;  %vm1837_vm14 = vweird.f32 %v1815_v13 }
 0x365   : > { %v1622_v39 = vmul.f32 %v1621_v37, %v3306_v17  ;;  %v1623_v19 = vmul.f32 %v1621_v37, %v3312_v3  ;;  %v1844_v8 = vor.u32 1.1754944e-38, %v1843_v18  ;;  %vm1842_vm0 = vcmp.eq.f32.partialorder %v1841_v4, 8.507059e+37 }
 0x366   : > { %v1819_v59 = vmul.f32 %v2423_v31, %v1818_v54 }
 0x367   : > { %1643 = vmatmul.f32.gmra.mxu1 %v1622_v39  ;;  %2180 = vst [vmem:[%s3411_s8 + $0x50] sm:$0xff] %v1622_v39  ;;  %1666 = vmatmul.f32.gmra.mxu2 %v1623_v19 }
 0x368   : > { %v1820_v52 = vadd.f32 %v2423_v31, %v1819_v59  ;;  %2181 = vst [vmem:[%s3411_s8 + $0x58] sm:$0xff] %v1623_v19 }
 0x369   : > { %v2425_v15 = vpop.eup %2424 }
 0x36a   : > { %v1833_v50 = vmul.f32 %v2425_v15, %v1815_v13  ;;  %v1824_v53 = vsel %vm1823_vm11, %v2423_v31, %v1820_v52  ;;  %vm1838_vm13 = vweird.f32 %v2425_v15 }
 0x36b   : > { %v1829_v16 = vsel %vm1826_vm12, %v1828_v45, %v1824_v53  ;;  %vm1839_vm15 = vmor %vm1837_vm14, %vm1838_vm13 }
 0x36c   : > { %v1834_v14 = vsub.f32 1.0, %v1833_v50  ;;  %v1830_v17 = vmul.f32 %v1829_v16, %v3331_v1  ;;  %v1831_v3 = vmul.f32 %v1829_v16, %v3336_v28 }
 0x36e   : > { %v1835_v23 = vmul.f32 %v2425_v15, %v1834_v14  ;;  %2188 = vst [vmem:[%s3411_s8 + $0x60] sm:$0xff] %v1830_v17 }
 0x36f   : > { %2189 = vst [vmem:[%s3411_s8 + $0x68] sm:$0xff] %v1831_v3  ;;  %1864 = vmatmul.f32.vlgmr.msrb.gmra.mxu1 %v1830_v17  ;;  %1887 = vmatmul.f32.vlgmr.msrb.gmra.mxu2 %v1831_v3 }
 0x370   : > { %v1836_v56 = vadd.f32 %v2425_v15, %v1835_v23 }
 0x372   : > { %v1840_v62 = vsel %vm1839_vm15, %v2425_v15, %v1836_v56 }
 0x373   : > { %v1845_v1 = vsel %vm1842_vm0, %v1844_v8, %v1840_v62 }
 0x374   : > { %v1846_v28 = vmul.f32 %v1845_v1, %v3358_v29  ;;  %v1847_v38 = vmul.f32 %v1845_v1, %v3363_v42 }
 0x376   : > { %2190 = vst [vmem:[%s3411_s8 + $0x70] sm:$0xff] %v1846_v28 }
 0x377   : > { %2191 = vst [vmem:[%s3411_s8 + $0x78] sm:$0xff] %v1847_v38  ;;  %1867 = vmatmul.f32.gmra.mxu1 %v1846_v28  ;;  %1890 = vmatmul.f32.gmra.mxu2 %v1847_v38 }
 0x39e   : > { %v1195_v26 = vpop.f32.mrf.mxu1 }
 0x3a4   : > { %v1218_v21 = vpop.f32.mrf.mxu2 }
 0x3a5   : > { %v1219_v27 = vadd.f32 %v1218_v21, %v1195_v26 }
 0x3a6   : > { %v1198_v25 = vpop.f32.mrf.mxu1 }
 0x3a7   : > { %1224 = vst [vmem:[%s3509_s18] sm:$0xff] %v1219_v27 }
 0x3ac   : > { %v1221_v29 = vpop.f32.mrf.mxu2 }
 0x3ad   : > { %v1222_v9 = vadd.f32 %v1221_v29, %v1198_v25 }
 0x3af   : > { %1225 = vst [vmem:[%s3509_s18 + $0x8] sm:$0xff] %v1222_v9 }
 0x3ba   : > { %v1417_v42 = vpop.f32.mrf.mxu1 }
 0x3c0   : > { %v1440_v12 = vpop.f32.mrf.mxu2 }
 0x3c1   : > { %v1441_v33 = vadd.f32 %v1440_v12, %v1417_v42 }
 0x3c3   : > { %2166 = vst [vmem:[%s3509_s18 + $0x10] sm:$0xff] %v1441_v33 }
 0x3c4   : > { %v1420_v35 = vpop.f32.mrf.mxu1 }
 0x3ca   : > { %v1443_v7 = vpop.f32.mrf.mxu2 }
 0x3cb   : > { %v1444_v20 = vadd.f32 %v1443_v7, %v1420_v35 }
 0x3cd   : > { %2167 = vst [vmem:[%s3509_s18 + $0x18] sm:$0xff] %v1444_v20 }
 0x3dc   : > { %v1641_v47 = vpop.f32.mrf.mxu1 }
 0x3e2   : > { %v1664_v49 = vpop.f32.mrf.mxu2 }
 0x3e3   : > { %v1665_v60 = vadd.f32 %v1664_v49, %v1641_v47 }
 0x3e4   : > { %v1644_v44 = vpop.f32.mrf.mxu1 }
 0x3e5   : > { %2176 = vst [vmem:[%s3509_s18 + $0x20] sm:$0xff] %v1665_v60 }
 0x3ea   : > { %v1667_v61 = vpop.f32.mrf.mxu2 }
 0x3eb   : > { %v1668_v0 = vadd.f32 %v1667_v61, %v1644_v44 }
 0x3ec   : > { %v1865_v10 = vpop.f32.mrf.mxu1 }
 0x3ed   : > { %2177 = vst [vmem:[%s3509_s18 + $0x28] sm:$0xff] %v1668_v0 }
 0x3f2   : > { %v1888_v11 = vpop.f32.mrf.mxu2 }
 0x3f3   : > { %v1889_v57 = vadd.f32 %v1888_v11, %v1865_v10 }
 0x3f4   : > { %v1868_v32 = vpop.f32.mrf.mxu1 }
 0x3f5   : > { %2186 = vst [vmem:[%s3509_s18 + $0x30] sm:$0xff] %v1889_v57 }
 0x3fa   : > { %v1891_v30 = vpop.f32.mrf.mxu2 }
 0x3fb   : > { %v1892_v41 = vadd.f32 %v1891_v30, %v1868_v32 }
 0x3fd   : > { %2187 = vst [vmem:[%s3509_s18 + $0x38] sm:$0xff] %v1892_v41 }
 0x3fe   : > { %s2203_s29 = sshll.u32 %s2708_s25, 4  ;;  %s1930_s12 = sshll.u32 %s3509_s18, 4  ;;  %s1931_s12 = int_to_ptr.vmem [resolvable:$true] %s1930_s12 }
 0x3ff   : > { %s1919_s7 = scalar_lea.hbm %s3583_s5, %s2203_s29  ;;  %s2638_s15 = smov 256  }
 0x400   : > { %s1932_s17 = sshll.u32 %s1919_s7, 4  ;;  %2224 = sst [smem:[#allocation15]] (%p2776_p3), %s2638_s15  ;;  %s1933_s17 = int_to_ptr.hbm [resolvable:$true] %s1932_s17 }
 0x401   : > { %s2639_s16 = smov 1024   ;;  %s2640_s11 = smov 2  }
 0x402   : > { %2225 = sst [smem:[#allocation15 + $0x1]] (%p2776_p3), %s2639_s16  ;;  %s2641_s27 = smov 128  }
 0x403   : > { %2226 = sst [smem:[#allocation15 + $0x2]] (%p2776_p3), %s2640_s11  ;;  %s2642_s18 = smov 8  }
 0x404   : > { %2227 = sst [smem:[#allocation15 + $0x3]] (%p2776_p3), %s2641_s27  ;;  %s2643_s29 = smov [#allocation14]  }
 0x405   : > { %2228 = sst [smem:[#allocation15 + $0x4]] (%p2776_p3), %s2641_s27  ;;  %s2644_s13 = smov 0  }
 0x406   : > { %2229 = sst [smem:[#allocation15 + $0x5]] (%p2776_p3), %s2642_s18 }
 0x407   : > { %2230 = dma.general (%p2776_p3), %s1931_s12, 1024, %s1933_s17, %s1903_s19, %s2643_s29, [#allocation15], %s2644_s13, 0  }
 0x408   : > { %s2205_s14 = sshll.u32 %s2708_s25, 5  ;;  %s1971_s7 = sshll.u32 %s3411_s8, 4  ;;  %s1972_s7 = int_to_ptr.vmem [resolvable:$true] %s1971_s7 }
 0x409   : > { %s1960_s11 = scalar_lea.hbm %s3584_s6, %s2205_s14  ;;  %s2645_s19 = smov 512  }
 0x40a   : > { %s1973_s27 = sshll.u32 %s1960_s11, 4  ;;  %2231 = sst [smem:[#allocation17]] (%p2776_p3), %s2645_s19  ;;  %s1974_s27 = int_to_ptr.hbm [resolvable:$true] %s1973_s27 }
 0x40b   : > { %s2646_s12 = smov 2048   ;;  %s2647_s17 = smov 2  }
 0x40c   : > { %2232 = sst [smem:[#allocation17 + $0x1]] (%p2776_p3), %s2646_s12  ;;  %s2648_s25 = smov 256  }
 0x40d   : > { %2233 = sst [smem:[#allocation17 + $0x2]] (%p2776_p3), %s2647_s17  ;;  %s2649_s8 = smov 16  }
 0x40e   : > { %2234 = sst [smem:[#allocation17 + $0x3]] (%p2776_p3), %s2648_s25  ;;  %s2650_s18 = smov [#allocation16]  }
 0x40f   : > { %2235 = sst [smem:[#allocation17 + $0x4]] (%p2776_p3), %s2648_s25  ;;  %s2651_s29 = smov 0  }
 0x410   : > { %2236 = sst [smem:[#allocation17 + $0x5]] (%p2776_p3), %s2649_s8 }
 0x411   : > { %2237 = dma.general (%p2776_p3), %s1972_s7, 2048, %s1974_s27, %s1908_s26, %s2650_s18, [#allocation17], %s2651_s29, 0  }
 0x412 PF: > { %p2273_p1 = scmp.ge.s32.totalorder %s2626_s24, 2  ;;  %s2001_s13 = sand.u32 1, %s2614_s21  }
 0x413   : > { %s2002_s14 = scalar_lea.sflag [#allocation4], %s2001_s13 }
 0x414   : > { %p2258_p4 = pnand %p2273_p1, %p2722_p6 }
 0x416   : > { %p2259_p8 = pneg %p2258_p4 }
 0x418   : > { %2605 = dma.done.wait (%p2259_p8), %s2002_s14, 1024  }
 0x419   : > { %2607 = vsyncadd (%p2259_p8), %s2002_s14, 4294966272  ;;  %s2012_s15 = scalar_lea.sflag [#allocation13], %s2001_s13 }
 0x41a   : > { %2609 = dma.done.wait (%p2259_p8), %s2012_s15, 2048  }
 0x41b   : > { %2611 = vsyncadd (%p2259_p8), %s2012_s15, 4294965248  ;;  %p25_p3 = scmp.ge.s32.totalorder %s2763_s20, 6   ;;  %s3599_s21 = smov %s2618_s22 }
 0x41c   : > { %s3600_s22 = smov %s2622_s23  ;;  %s3601_s23 = smov %s2772_s30 }
 0x41d   : > { %s3602_s24 = smov %s2763_s20  ;;  %27 = sbr.rel (!%p25_p3) target bundleno = 9 (0x9), region = 134 }
 0x422   :  { %2018 = vsyncpa [#allocation3], 1 }
 0x423   :  { %2020 = vsyncpa [#allocation3 + $0x1], 1 }
 0x424   :  { %2021 = vsyncpa [#allocation6], 1 }
 0x425   :  { %2022 = vsyncpa [#allocation9], 1 }
 0x426   :  { %2023 = vsyncpa [#allocation4], 1 }
 0x427   :  { %2025 = vsyncpa [#allocation4 + $0x1], 1 }
 0x428   :  { %2026 = vsyncpa [#allocation13], 1 }
 0x429   :  { %2028 = vsyncpa [#allocation13 + $0x1], 1 }

</bundles_post_ra>
